<compile_context>
chip_gen: v7x
topology: tpu7x:2x2x1
jax: 0.10.0
libtpu: 0.0.40
codegen_flags: <defaults>
</compile_context>

<pallas_src>
import functools

import jax
import jax.numpy as jnp
import numpy as np
from jax.experimental import pallas as pl
from jax.experimental.pallas import tpu as pltpu


# --------------------------------------------------------------------------- #
# Small helpers
# --------------------------------------------------------------------------- #
def _pick_tile(n, preferred):
    for t in preferred:
        if t <= n and n % t == 0:
            return t
    return n  # block equal to the full dim is always legal


def _vmem_limit_bytes():
    # ~85% of physical VMEM: ~109 MiB on v5e/v6e (128 MiB), ~54 MiB on v7x
    # (64 MiB) -- leaves headroom for Mosaic internal scratch / semaphores.
    try:
        cap = int(pltpu.get_tpu_info().vmem_capacity_bytes)
        return max(32 * 1024 * 1024, int(cap * 0.85))
    except Exception:
        return 64 * 1024 * 1024


@functools.lru_cache(maxsize=1)
def _buffered_supported():
    """Probe whether pipeline_mode=pl.Buffered(1) works on this jax/TPU combo."""
    try:
        def k(w_ref, x_ref, o_ref):
            o_ref[...] = x_ref[...] + w_ref[...]

        f = pl.pallas_call(
            k,
            out_shape=jax.ShapeDtypeStruct((8, 128), jnp.float32),
            grid=(1,),
            in_specs=[
                pl.BlockSpec((8, 128), lambda i: (0, 0),
                             pipeline_mode=pl.Buffered(1)),
                pl.BlockSpec((8, 128), lambda i: (0, 0)),
            ],
            out_specs=pl.BlockSpec((8, 128), lambda i: (0, 0)),
        )
        jax.block_until_ready(
            f(jnp.zeros((8, 128), jnp.float32), jnp.ones((8, 128), jnp.float32)))
        return True
    except Exception:
        return False


def _const_spec(shape):
    """BlockSpec for a grid-invariant (resident) block; single-buffered if possible."""
    nd = len(shape)
    idx = lambda *args: (0,) * nd
    if _buffered_supported():
        return pl.BlockSpec(shape, idx, pipeline_mode=pl.Buffered(1))
    return pl.BlockSpec(shape, idx)


# --------------------------------------------------------------------------- #
# Kernel A: modulate(norm1(x)) -> QKV projection -> vectorized Q/K RMS-norm.
# Grid = (batch, seq_tile).  One fused bf16 output slab (B, N, 3*inner).
# --------------------------------------------------------------------------- #
def qkv_kernel(x_ref, mod_ref, wqkv_ref, gq_ref, gk_ref, ones_ref,
               qkv_ref, *, heads, dim_head):
    x = x_ref[0].astype(jnp.float32)          # (TQ, D)  stats in f32
    mod = mod_ref[0]                          # (1, 6D)  f32
    D = x.shape[-1]
    inner = heads * dim_head

    shift_msa = mod[:, 0 * D:1 * D]
    scale_msa = mod[:, 1 * D:2 * D]

    # LayerNorm (elementwise_affine=False, eps=1e-6) + adaLN modulate, f32.
    mu = jnp.mean(x, axis=-1, keepdims=True)
    var = jnp.mean((x - mu) ** 2, axis=-1, keepdims=True)
    h = (x - mu) * jax.lax.rsqrt(var + 1e-6)
    h = h * (1.0 + scale_msa) + shift_msa

    # QKV projection on the MXU (bf16 operands, f32 accumulate).
    qkv = jnp.dot(h.astype(wqkv_ref.dtype), wqkv_ref[...],
                  preferred_element_type=jnp.float32)     # (TQ, 3*inner)
    q = qkv[:, 0 * inner:1 * inner]
    k = qkv[:, 1 * inner:2 * inner]
    v = qkv[:, 2 * inner:3 * inner]

    # Per-head sum-of-squares via a single bf16 MXU matmul against a
    # block-diagonal 0/1 matrix (f32 accumulation); no per-head slicing.
    qq = (q * q).astype(ones_ref.dtype)
    kk = (k * k).astype(ones_ref.dtype)
    qss = jnp.dot(qq, ones_ref[...], preferred_element_type=jnp.float32)
    kss = jnp.dot(kk, ones_ref[...], preferred_element_type=jnp.float32)

    # torch F.normalize(dim=-1): x / max(||x||, 1e-12) == x * rsqrt(max(ss,1e-24)).
    # sqrt(Dh) and the 1/sqrt(Dh) attention scale are pre-folded into gq/gk.
    qn = q * jax.lax.rsqrt(jnp.maximum(qss, 1e-24)) * gq_ref[...]
    kn = k * jax.lax.rsqrt(jnp.maximum(kss, 1e-24)) * gk_ref[...]

    qkv_ref[0, :, 0 * inner:1 * inner] = qn.astype(qkv_ref.dtype)
    qkv_ref[0, :, 1 * inner:2 * inner] = kn.astype(qkv_ref.dtype)
    qkv_ref[0, :, 2 * inner:3 * inner] = v.astype(qkv_ref.dtype)


# --------------------------------------------------------------------------- #
# Kernel B: flash-style streamed attention (online softmax over kv tiles) +
# gated residual + norm2/modulate + FF + gated residual.
# Grid = (batch, q_tile, kv_tile); kv axis is "arbitrary" (accumulator).
# --------------------------------------------------------------------------- #
def attn_ff_kernel(x_ref, q_ref, k_ref, v_ref, mod_ref,
                   w1_ref, b1_ref, w2_ref, b2_ref, o_ref,
                   q3_sc, m_sc, l_sc, acc_sc, *, heads, dim_head):
    kv = pl.program_id(2)
    nkv = pl.num_programs(2)
    inner = heads * dim_head

    @pl.when(kv == 0)
    def _init():
        q = q_ref[0]                                             # (TQ, inner) bf16
        tq = q.shape[0]
        q3_sc[...] = jnp.transpose(q.reshape(tq, heads, dim_head), (1, 0, 2))
        m_sc[...] = jnp.full_like(m_sc, -jnp.inf)
        l_sc[...] = jnp.zeros_like(l_sc)
        acc_sc[...] = jnp.zeros_like(acc_sc)

    # --- one streamed kv tile ---
    k = k_ref[0]                                                 # (TK, inner) bf16
    v = v_ref[0]
    tk = k.shape[0]
    k3 = jnp.transpose(k.reshape(tk, heads, dim_head), (1, 0, 2))   # (H, TK, Dh)
    v3 = jnp.transpose(v.reshape(tk, heads, dim_head), (1, 0, 2))

    # softmax scale already folded into the gammas in the wrapper.
    s = jnp.einsum('hqd,hkd->hqk', q3_sc[...], k3,
                   preferred_element_type=jnp.float32)              # (H, TQ, TK) f32

    m_prev = m_sc[...]
    m_new = jnp.maximum(m_prev, jnp.max(s, axis=-1, keepdims=True))
    alpha = jnp.exp(m_prev - m_new)                                 # (H, TQ, 1) f32
    # probabilities in bf16 after the max subtraction (v6e/v7x bf16 EUP path;
    # on v5e the compiler falls back to f32 internally); denominator in f32.
    p = jnp.exp((s - m_new).astype(jnp.bfloat16))                   # (H, TQ, TK) bf16
    l_sc[...] = alpha * l_sc[...] + jnp.sum(p.astype(jnp.float32),
                                            axis=-1, keepdims=True)
    acc_sc[...] = alpha * acc_sc[...] + jnp.einsum(
        'hqk,hkd->hqd', p, v3, preferred_element_type=jnp.float32)
    m_sc[...] = m_new

    # --- finalize: residuals + FF on the last kv step ---
    @pl.when(kv == nkv - 1)
    def _finish():
        x = x_ref[0].astype(jnp.float32)                            # (TQ, D)
        D = x.shape[-1]
        tq = x.shape[0]
        mod = mod_ref[0]                                            # (1, 6D) f32
        gate_msa = mod[:, 2 * D:3 * D]
        shift_ff = mod[:, 3 * D:4 * D]
        scale_ff = mod[:, 4 * D:5 * D]
        gate_ff = mod[:, 5 * D:6 * D]

        inv_l = pl.reciprocal(l_sc[...], approx=True)               # (H, TQ, 1)
        attn = acc_sc[...] * inv_l                                  # (H, TQ, Dh) f32
        attn = jnp.transpose(attn, (1, 0, 2)).reshape(tq, inner)    # (TQ, inner)

        x1 = x + gate_msa * attn

        mu = jnp.mean(x1, axis=-1, keepdims=True)
        var = jnp.mean((x1 - mu) ** 2, axis=-1, keepdims=True)
        h2 = (x1 - mu) * jax.lax.rsqrt(var + 1e-6)
        h2 = h2 * (1.0 + scale_ff) + shift_ff

        ff = jnp.dot(h2.astype(w1_ref.dtype), w1_ref[...],
                     preferred_element_type=jnp.float32) + b1_ref[...]
        ff = ff * jax.nn.sigmoid(ff)                                # SiLU (f32)
        ff = jnp.dot(ff.astype(w2_ref.dtype), w2_ref[...],
                     preferred_element_type=jnp.float32) + b2_ref[...]

        o_ref[0] = (x1 + gate_ff * ff).astype(o_ref.dtype)


# --------------------------------------------------------------------------- #
# Wrapper
# --------------------------------------------------------------------------- #
def dit_block(x, c, params, *, heads, dim_head, q_tile=None, kv_tile=None,
              mxu_dtype=jnp.bfloat16):
    B, N, D = x.shape
    inner = heads * dim_head
    assert inner == D, "DiTBlock has no attention out-projection: H*Dh must equal dim_h"
    dim_ff = params["w1"].shape[1]
    f32 = jnp.float32

    # --- hoisted modulation MLP (tiny (B,D) matvec, plain XLA) ---
    c32 = c.astype(f32)
    mod = (c32 * jax.nn.sigmoid(c32)) @ params["w_mod"].astype(f32) \
        + params["b_mod"].astype(f32)                        # (B, 6D)
    mod = mod.reshape(B, 1, 6 * D)

    # --- flat, pre-scaled gammas; fold the 1/sqrt(Dh) softmax scale in ---
    #  (norm(q)*gq*sqrt(Dh)) @ (norm(k)*gk*sqrt(Dh))^T / sqrt(Dh)
    #   = (norm(q)*gq) @ (norm(k)*gk*sqrt(Dh))^T
    gq = params["gamma_q"].reshape(1, inner).astype(f32)
    gk = (params["gamma_k"].reshape(1, inner) * (dim_head ** 0.5)).astype(f32)

    # block-diagonal 0/1 matrix in bf16: per-head sum-of-squares on the MXU.
    hid = jnp.arange(inner, dtype=jnp.int32) // dim_head
    ones_bd = (hid[:, None] == hid[None, :]).astype(mxu_dtype)   # (inner, inner)

    # bf16 weights (halves VMEM + HBM traffic, native MXU dtype)
    w_qkv = params["w_qkv"].astype(mxu_dtype)
    w1 = params["w1"].astype(mxu_dtype)
    w2 = params["w2"].astype(mxu_dtype)
    b1 = params["b1"].astype(f32)
    b2 = params["b2"].astype(f32)

    if q_tile is None:
        q_tile = _pick_tile(N, (256, 128, 64, 32, 16, 8))
    if kv_tile is None:
        kv_tile = _pick_tile(N, (512, 256, 128, 64, 32, 16, 8))
    nq = N // q_tile
    nkv = N // kv_tile

    vmem_limit = _vmem_limit_bytes()

    # ---- kernel A: modulated norm1 + QKV projection + RMS-norm ----
    qkv = pl.pallas_call(
        functools.partial(qkv_kernel, heads=heads, dim_head=dim_head),
        out_shape=jax.ShapeDtypeStruct((B, N, 3 * inner), mxu_dtype),
        grid=(B, nq),
        in_specs=[
            pl.BlockSpec((1, q_tile, D), lambda b, t: (b, t, 0)),    # x tile
            pl.BlockSpec((1, 1, 6 * D), lambda b, t: (b, 0, 0)),     # modulation
            _const_spec((D, 3 * inner)),                             # w_qkv (resident)
            _const_spec((1, inner)),                                 # gamma_q
            _const_spec((1, inner)),                                 # gamma_k
            _const_spec((inner, inner)),                             # block-diag ones
        ],
        out_specs=pl.BlockSpec((1, q_tile, 3 * inner), lambda b, t: (b, t, 0)),
        compiler_params=pltpu.CompilerParams(
            dimension_semantics=("parallel", "parallel"),
            vmem_limit_bytes=vmem_limit),
    )(x, mod, w_qkv, gq, gk, ones_bd)

    # ---- kernel B: streamed attention + residual + norm2/modulate + FF ----
    # NOTE(v7x): both batch and q-tile axes are "parallel" so the seq-tile axis
    # can be split across the two TensorCores even at B=1.
    out = pl.pallas_call(
        functools.partial(attn_ff_kernel, heads=heads, dim_head=dim_head),
        out_shape=jax.ShapeDtypeStruct((B, N, D), x.dtype),
        grid=(B, nq, nkv),
        in_specs=[
            pl.BlockSpec((1, q_tile, D), lambda b, q, k: (b, q, 0)),       # x tile
            pl.BlockSpec((1, q_tile, inner), lambda b, q, k: (b, q, 0)),   # q slab
            pl.BlockSpec((1, kv_tile, inner), lambda b, q, k: (b, k, 1)),  # k tile
            pl.BlockSpec((1, kv_tile, inner), lambda b, q, k: (b, k, 2)),  # v tile
            pl.BlockSpec((1, 1, 6 * D), lambda b, q, k: (b, 0, 0)),        # modulation
            _const_spec((D, dim_ff)),                                      # w1 (resident)
            _const_spec((1, dim_ff)),                                      # b1
            _const_spec((dim_ff, D)),                                      # w2
            _const_spec((1, D)),                                           # b2
        ],
        out_specs=pl.BlockSpec((1, q_tile, D), lambda b, q, k: (b, q, 0)),
        scratch_shapes=[
            pltpu.VMEM((heads, q_tile, dim_head), mxu_dtype),   # head-major q cache
            pltpu.VMEM((heads, q_tile, 1), jnp.float32),        # running max
            pltpu.VMEM((heads, q_tile, 1), jnp.float32),        # running denom
            pltpu.VMEM((heads, q_tile, dim_head), jnp.float32), # output accumulator
        ],
        compiler_params=pltpu.CompilerParams(
            dimension_semantics=("parallel", "parallel", "arbitrary"),
            vmem_limit_bytes=vmem_limit),
    )(x, qkv, qkv, qkv, mod, w1, b1, w2, b2)

    return out


# --------------------------------------------------------------------------- #
# Pure-JAX reference (mirrors the kernel's bf16 cast points; for the check)
# --------------------------------------------------------------------------- #
def dit_block_ref(x, c, params, *, heads, dim_head, mxu_dtype=jnp.bfloat16):
    B, N, D = x.shape
    inner = heads * dim_head
    f32 = jnp.float32
    cast = lambda a: a.astype(mxu_dtype)

    def ln(v):
        mu = jnp.mean(v, -1, keepdims=True)
        var = jnp.mean((v - mu) ** 2, -1, keepdims=True)
        return (v - mu) * jax.lax.rsqrt(var + 1e-6)

    x32 = x.astype(f32)
    c32 = c.astype(f32)
    mod = (c32 * jax.nn.sigmoid(c32)) @ params["w_mod"].astype(f32) + params["b_mod"].astype(f32)
    sm, scm, gm, sf, scf, gf = [mod[:, i * D:(i + 1) * D][:, None, :] for i in range(6)]

    h = ln(x32) * (1.0 + scm) + sm
    qkv = jnp.einsum('bnd,df->bnf', cast(h), cast(params["w_qkv"]),
                     preferred_element_type=f32)
    q, k, v = qkv[..., :inner], qkv[..., inner:2 * inner], qkv[..., 2 * inner:]
    r = lambda t: t.reshape(B, N, heads, dim_head).transpose(0, 2, 1, 3)
    q, k, v = r(q), r(k), r(v)

    def rms(t, g):  # torch F.normalize(dim=-1) * gamma * sqrt(Dh)
        t = t * jax.lax.rsqrt(jnp.maximum(jnp.sum(t * t, -1, keepdims=True), 1e-24))
        return t * g.astype(f32)[None, :, None, :] * (dim_head ** 0.5)

    q = rms(q, params["gamma_q"])
    k = rms(k, params["gamma_k"])
    q, k, v = cast(q), cast(k), cast(v)          # bf16 storage between kernels

    s = jnp.einsum('bhqd,bhkd->bhqk', q, k, preferred_element_type=f32)
    s = s / (dim_head ** 0.5)
    p = jax.nn.softmax(s, axis=-1)
    o = jnp.einsum('bhqk,bhkd->bhqd', cast(p), v, preferred_element_type=f32)
    o = o.transpose(0, 2, 1, 3).reshape(B, N, D)
    x1 = x32 + gm * o

    h2 = ln(x1) * (1.0 + scf) + sf
    ff = jnp.einsum('bnd,df->bnf', cast(h2), cast(params["w1"]),
                    preferred_element_type=f32) + params["b1"].astype(f32)[0]
    ff = ff * jax.nn.sigmoid(ff)
    ff = jnp.einsum('bnf,fd->bnd', cast(ff), cast(params["w2"]),
                    preferred_element_type=f32) + params["b2"].astype(f32)[0]
    return (x1 + gf * ff).astype(x.dtype)


# --------------------------------------------------------------------------- #
if __name__ == "__main__":
    # Small but tiling-exercising shapes: grid A = (2, 2), grid B = (2, 2, 2).
    B, N = 2, 256
    heads, dim_head = 4, 32
    D = heads * dim_head              # dim_h == heads*dim_head (no out-proj)
    dim_mult = 4
    dim_ff = D * dim_mult

    key = jax.random.PRNGKey(0)
    ks = jax.random.split(key, 12)

    params = {
        "w_mod": 0.02 * jax.random.normal(ks[0], (D, 6 * D), jnp.float32),
        "b_mod": 0.02 * jax.random.normal(ks[1], (1, 6 * D), jnp.float32),
        "w_qkv": 0.02 * jax.random.normal(ks[2], (D, 3 * heads * dim_head), jnp.float32),
        # torch init is ones; perturb so the RMS-norm scaling is actually tested
        "gamma_q": 1.0 + 0.1 * jax.random.normal(ks[9], (heads, dim_head), jnp.float32),
        "gamma_k": 1.0 + 0.1 * jax.random.normal(ks[10], (heads, dim_head), jnp.float32),
        "w1": 0.02 * jax.random.normal(ks[3], (D, dim_ff), jnp.float32),
        "b1": 0.02 * jax.random.normal(ks[4], (1, dim_ff), jnp.float32),
        "w2": 0.02 * jax.random.normal(ks[5], (dim_ff, D), jnp.float32),
        "b2": 0.02 * jax.random.normal(ks[6], (1, D), jnp.float32),
    }

    x = jax.random.normal(ks[7], (B, N, D), jnp.float32)
    c = jax.random.normal(ks[8], (B, D), jnp.float32)

    out = dit_block(x, c, params, heads=heads, dim_head=dim_head,
                    q_tile=128, kv_tile=128)
    out = jax.block_until_ready(out)

    ref = jax.block_until_ready(
        dit_block_ref(x, c, params, heads=heads, dim_head=dim_head))
    np.testing.assert_allclose(np.asarray(out), np.asarray(ref), rtol=2e-2, atol=2e-2)

    print("KERNEL_OK")
</pallas_src>

<mosaic_0001>
module attributes {stable_mosaic.version = 11 : i64} {
  func.func @k(%arg0: i32, %arg1: memref<8x128xf32, #tpu.memory_space<vmem>>, %arg2: memref<8x128xf32, #tpu.memory_space<vmem>>, %arg3: memref<8x128xf32, #tpu.memory_space<vmem>>) attributes {dimension_semantics = [#tpu.dimension_semantics<arbitrary>], iteration_bounds = array<i64: 1>, scalar_prefetch = 0 : i64, scratch_operands = 0 : i64, tpu.core_type = #tpu.core_type<tc>, window_params = [{pipeline_mode = #tpu.pipeline_mode<synchronous>, transform_indices = @transform_0, window_bounds = array<i64: 8, 128>}, {pipeline_mode = #tpu.pipeline_mode<synchronous>, transform_indices = @transform_1, window_bounds = array<i64: 8, 128>}, {pipeline_mode = #tpu.pipeline_mode<synchronous>, transform_indices = @transform_2, window_bounds = array<i64: 8, 128>}]} {
    %c0 = arith.constant 0 : index
    %c0_0 = arith.constant 0 : index
    %0 = vector.load %arg2[%c0, %c0_0] : memref<8x128xf32, #tpu.memory_space<vmem>>, vector<8x128xf32>
    %c0_1 = arith.constant 0 : index
    %c0_2 = arith.constant 0 : index
    %1 = vector.load %arg1[%c0_1, %c0_2] : memref<8x128xf32, #tpu.memory_space<vmem>>, vector<8x128xf32>
    %2 = arith.addf %0, %1 : vector<8x128xf32>
    %c0_3 = arith.constant 0 : index
    %c0_4 = arith.constant 0 : index
    %3 = vector.load %arg3[%c0_3, %c0_4] : memref<8x128xf32, #tpu.memory_space<vmem>>, vector<8x128xf32>
    tpu.vector_store %arg3[%c0_3, %c0_4], %2 {strides = array<i32>} : memref<8x128xf32, #tpu.memory_space<vmem>>, vector<8x128xf32>,
    return
  }
  func.func @transform_0(%arg0: i32) -> (i32, i32) {
    %c0_i32 = arith.constant 0 : i32
    %c0_i32_0 = arith.constant 0 : i32
    %c0_i32_1 = arith.constant 0 : i32
    return %c0_i32, %c0_i32_0 : i32, i32
  }
  func.func @transform_1(%arg0: i32) -> (i32, i32) {
    %c0_i32 = arith.constant 0 : i32
    %c0_i32_0 = arith.constant 0 : i32
    %c0_i32_1 = arith.constant 0 : i32
    return %c0_i32, %c0_i32_0 : i32, i32
  }
  func.func @transform_2(%arg0: i32) -> (i32, i32) {
    %c0_i32 = arith.constant 0 : i32
    %c0_i32_0 = arith.constant 0 : i32
    %c0_i32_1 = arith.constant 0 : i32
    return %c0_i32, %c0_i32_0 : i32, i32
  }
}

module attributes {stable_mosaic.version = 11 : i64} {
  func.func @qkv_kernel(%arg0: i32, %arg1: i32, %arg2: memref<1x128x128xf32, #tpu.memory_space<vmem>>, %arg3: memref<1x1x768xf32, #tpu.memory_space<vmem>>, %arg4: memref<128x384xbf16, #tpu.memory_space<vmem>>, %arg5: memref<1x128xf32, #tpu.memory_space<vmem>>, %arg6: memref<1x128xf32, #tpu.memory_space<vmem>>, %arg7: memref<128x128xbf16, #tpu.memory_space<vmem>>, %arg8: memref<1x128x384xbf16, #tpu.memory_space<vmem>>) attributes {dimension_semantics = [#tpu.dimension_semantics<parallel>, #tpu.dimension_semantics<parallel>], iteration_bounds = array<i64: 2, 2>, scalar_prefetch = 0 : i64, scratch_operands = 0 : i64, tpu.core_type = #tpu.core_type<tc>, window_params = [{transform_indices = @transform_0, window_bounds = array<i64: 1, 128, 128>}, {transform_indices = @transform_1, window_bounds = array<i64: 1, 1, 768>}, {pipeline_mode = #tpu.pipeline_mode<synchronous>, transform_indices = @transform_2, window_bounds = array<i64: 128, 384>}, {pipeline_mode = #tpu.pipeline_mode<synchronous>, transform_indices = @transform_3, window_bounds = array<i64: 1, 128>}, {pipeline_mode = #tpu.pipeline_mode<synchronous>, transform_indices = @transform_4, window_bounds = array<i64: 1, 128>}, {pipeline_mode = #tpu.pipeline_mode<synchronous>, transform_indices = @transform_5, window_bounds = array<i64: 128, 128>}, {transform_indices = @transform_6, window_bounds = array<i64: 1, 128, 384>}]} {
    %c0 = arith.constant 0 : index
    %c0_0 = arith.constant 0 : index
    %c0_1 = arith.constant 0 : index
    %0 = vector.load %arg2[%c0, %c0_0, %c0_1] : memref<1x128x128xf32, #tpu.memory_space<vmem>>, vector<1x128x128xf32>
    %1 = vector.shape_cast %0 : vector<1x128x128xf32> to vector<128x128xf32>
    %c0_2 = arith.constant 0 : index
    %c0_3 = arith.constant 0 : index
    %c0_4 = arith.constant 0 : index
    %2 = vector.load %arg3[%c0_2, %c0_3, %c0_4] : memref<1x1x768xf32, #tpu.memory_space<vmem>>, vector<1x1x768xf32>
    %3 = vector.shape_cast %2 : vector<1x1x768xf32> to vector<1x768xf32>
    %4 = vector.extract_strided_slice %3 {offsets = [0, 0], sizes = [1, 128], strides = [1, 1]} : vector<1x768xf32> to vector<1x128xf32>
    %5 = vector.extract_strided_slice %3 {offsets = [0, 128], sizes = [1, 128], strides = [1, 1]} : vector<1x768xf32> to vector<1x128xf32>
    %cst = arith.constant dense<0.000000e+00> : vector<128xf32>
    %6 = vector.multi_reduction <add>, %1, %cst [1] : vector<128x128xf32> to vector<128xf32>
    %7 = vector.shape_cast %6 : vector<128xf32> to vector<128x1xf32>
    %cst_5 = arith.constant 1.280000e+02 : f32
    %8 = vector.broadcast %cst_5 : f32 to vector<128x1xf32>
    %9 = arith.divf %7, %8 : vector<128x1xf32>
    %10 = vector.broadcast %9 : vector<128x1xf32> to vector<128x128xf32>
    %11 = arith.subf %1, %10 : vector<128x128xf32>
    %12 = arith.mulf %11, %11 : vector<128x128xf32>
    %cst_6 = arith.constant dense<0.000000e+00> : vector<128xf32>
    %13 = vector.multi_reduction <add>, %12, %cst_6 [1] : vector<128x128xf32> to vector<128xf32>
    %14 = vector.shape_cast %13 : vector<128xf32> to vector<128x1xf32>
    %cst_7 = arith.constant 1.280000e+02 : f32
    %15 = vector.broadcast %cst_7 : f32 to vector<128x1xf32>
    %16 = arith.divf %14, %15 : vector<128x1xf32>
    %17 = vector.broadcast %9 : vector<128x1xf32> to vector<128x128xf32>
    %18 = arith.subf %1, %17 : vector<128x128xf32>
    %cst_8 = arith.constant 9.99999997E-7 : f32
    %19 = vector.broadcast %cst_8 : f32 to vector<128x1xf32>
    %20 = arith.addf %16, %19 : vector<128x1xf32>
    %21 = math.rsqrt %20 : vector<128x1xf32>
    %22 = vector.broadcast %21 : vector<128x1xf32> to vector<128x128xf32>
    %23 = arith.mulf %18, %22 : vector<128x128xf32>
    %cst_9 = arith.constant 1.000000e+00 : f32
    %24 = vector.broadcast %cst_9 : f32 to vector<1x128xf32>
    %25 = arith.addf %24, %5 : vector<1x128xf32>
    %26 = vector.broadcast %25 : vector<1x128xf32> to vector<128x128xf32>
    %27 = arith.mulf %23, %26 : vector<128x128xf32>
    %28 = vector.broadcast %4 : vector<1x128xf32> to vector<128x128xf32>
    %29 = arith.addf %27, %28 : vector<128x128xf32>
    %30 = arith.truncf %29 : vector<128x128xf32> to vector<128x128xbf16>
    %c0_10 = arith.constant 0 : index
    %c0_11 = arith.constant 0 : index
    %31 = vector.load %arg4[%c0_10, %c0_11] : memref<128x384xbf16, #tpu.memory_space<vmem>>, vector<128x384xbf16>
    %cst_12 = arith.constant dense<0.000000e+00> : vector<128x384xf32>
    %32 = tpu.matmul %30, %31, %cst_12 {dimension_numbers = #tpu.dot_dimension_numbers<[1], [0], [0], [1], [0, 0, 1, 1], [], []>} : vector<128x128xbf16>, vector<128x384xbf16>, vector<128x384xf32> -> vector<128x384xf32>
    %33 = vector.extract_strided_slice %32 {offsets = [0, 0], sizes = [128, 128], strides = [1, 1]} : vector<128x384xf32> to vector<128x128xf32>
    %34 = vector.extract_strided_slice %32 {offsets = [0, 128], sizes = [128, 128], strides = [1, 1]} : vector<128x384xf32> to vector<128x128xf32>
    %35 = vector.extract_strided_slice %32 {offsets = [0, 256], sizes = [128, 128], strides = [1, 1]} : vector<128x384xf32> to vector<128x128xf32>
    %36 = arith.mulf %33, %33 : vector<128x128xf32>
    %37 = arith.truncf %36 : vector<128x128xf32> to vector<128x128xbf16>
    %38 = arith.mulf %34, %34 : vector<128x128xf32>
    %39 = arith.truncf %38 : vector<128x128xf32> to vector<128x128xbf16>
    %c0_13 = arith.constant 0 : index
    %c0_14 = arith.constant 0 : index
    %40 = vector.load %arg7[%c0_13, %c0_14] : memref<128x128xbf16, #tpu.memory_space<vmem>>, vector<128x128xbf16>
    %cst_15 = arith.constant dense<0.000000e+00> : vector<128x128xf32>
    %41 = tpu.matmul %37, %40, %cst_15 {dimension_numbers = #tpu.dot_dimension_numbers<[1], [0], [0], [1], [0, 0, 1, 1], [], []>} : vector<128x128xbf16>, vector<128x128xbf16>, vector<128x128xf32> -> vector<128x128xf32>
    %c0_16 = arith.constant 0 : index
    %c0_17 = arith.constant 0 : index
    %42 = vector.load %arg7[%c0_16, %c0_17] : memref<128x128xbf16, #tpu.memory_space<vmem>>, vector<128x128xbf16>
    %cst_18 = arith.constant dense<0.000000e+00> : vector<128x128xf32>
    %43 = tpu.matmul %39, %42, %cst_18 {dimension_numbers = #tpu.dot_dimension_numbers<[1], [0], [0], [1], [0, 0, 1, 1], [], []>} : vector<128x128xbf16>, vector<128x128xbf16>, vector<128x128xf32> -> vector<128x128xf32>
    %cst_19 = arith.constant 1.000000e-24 : f32
    %44 = vector.broadcast %cst_19 : f32 to vector<128x128xf32>
    %45 = arith.maximumf %41, %44 : vector<128x128xf32>
    %46 = math.rsqrt %45 : vector<128x128xf32>
    %47 = arith.mulf %33, %46 : vector<128x128xf32>
    %c0_20 = arith.constant 0 : index
    %c0_21 = arith.constant 0 : index
    %48 = vector.load %arg5[%c0_20, %c0_21] : memref<1x128xf32, #tpu.memory_space<vmem>>, vector<1x128xf32>
    %49 = vector.broadcast %48 : vector<1x128xf32> to vector<128x128xf32>
    %50 = arith.mulf %47, %49 : vector<128x128xf32>
    %cst_22 = arith.constant 1.000000e-24 : f32
    %51 = vector.broadcast %cst_22 : f32 to vector<128x128xf32>
    %52 = arith.maximumf %43, %51 : vector<128x128xf32>
    %53 = math.rsqrt %52 : vector<128x128xf32>
    %54 = arith.mulf %34, %53 : vector<128x128xf32>
    %c0_23 = arith.constant 0 : index
    %c0_24 = arith.constant 0 : index
    %55 = vector.load %arg6[%c0_23, %c0_24] : memref<1x128xf32, #tpu.memory_space<vmem>>, vector<1x128xf32>
    %56 = vector.broadcast %55 : vector<1x128xf32> to vector<128x128xf32>
    %57 = arith.mulf %54, %56 : vector<128x128xf32>
    %58 = arith.truncf %50 : vector<128x128xf32> to vector<128x128xbf16>
    %c0_25 = arith.constant 0 : index
    %c0_26 = arith.constant 0 : index
    %c0_27 = arith.constant 0 : index
    %59 = vector.load %arg8[%c0_25, %c0_26, %c0_27] : memref<1x128x384xbf16, #tpu.memory_space<vmem>>, vector<1x128x128xbf16>
    %60 = vector.shape_cast %59 : vector<1x128x128xbf16> to vector<128x128xbf16>
    %61 = vector.shape_cast %58 : vector<128x128xbf16> to vector<1x128x128xbf16>
    tpu.vector_store %arg8[%c0_25, %c0_26, %c0_27], %61 {strides = array<i32>} : memref<1x128x384xbf16, #tpu.memory_space<vmem>>, vector<1x128x128xbf16>,
    %62 = arith.truncf %57 : vector<128x128xf32> to vector<128x128xbf16>
    %c0_28 = arith.constant 0 : index
    %c0_29 = arith.constant 0 : index
    %c128 = arith.constant 128 : index
    %63 = vector.load %arg8[%c0_28, %c0_29, %c128] : memref<1x128x384xbf16, #tpu.memory_space<vmem>>, vector<1x128x128xbf16>
    %64 = vector.shape_cast %63 : vector<1x128x128xbf16> to vector<128x128xbf16>
    %65 = vector.shape_cast %62 : vector<128x128xbf16> to vector<1x128x128xbf16>
    tpu.vector_store %arg8[%c0_28, %c0_29, %c128], %65 {strides = array<i32>} : memref<1x128x384xbf16, #tpu.memory_space<vmem>>, vector<1x128x128xbf16>,
    %66 = arith.truncf %35 : vector<128x128xf32> to vector<128x128xbf16>
    %c0_30 = arith.constant 0 : index
    %c0_31 = arith.constant 0 : index
    %c256 = arith.constant 256 : index
    %67 = vector.load %arg8[%c0_30, %c0_31, %c256] : memref<1x128x384xbf16, #tpu.memory_space<vmem>>, vector<1x128x128xbf16>
    %68 = vector.shape_cast %67 : vector<1x128x128xbf16> to vector<128x128xbf16>
    %69 = vector.shape_cast %66 : vector<128x128xbf16> to vector<1x128x128xbf16>
    tpu.vector_store %arg8[%c0_30, %c0_31, %c256], %69 {strides = array<i32>} : memref<1x128x384xbf16, #tpu.memory_space<vmem>>, vector<1x128x128xbf16>,
    return
  }
  func.func @transform_0(%arg0: i32, %arg1: i32) -> (i32, i32, i32) {
    %c0_i32 = arith.constant 0 : i32
    %c0_i32_0 = arith.constant 0 : i32
    return %arg0, %arg1, %c0_i32 : i32, i32, i32
  }
  func.func @transform_1(%arg0: i32, %arg1: i32) -> (i32, i32, i32) {
    %c0_i32 = arith.constant 0 : i32
    %c0_i32_0 = arith.constant 0 : i32
    %c0_i32_1 = arith.constant 0 : i32
    return %arg0, %c0_i32, %c0_i32_0 : i32, i32, i32
  }
  func.func @transform_2(%arg0: i32, %arg1: i32) -> (i32, i32) {
    %c0_i32 = arith.constant 0 : i32
    %c0_i32_0 = arith.constant 0 : i32
    %c0_i32_1 = arith.constant 0 : i32
    return %c0_i32, %c0_i32_0 : i32, i32
  }
  func.func @transform_3(%arg0: i32, %arg1: i32) -> (i32, i32) {
    %c0_i32 = arith.constant 0 : i32
    %c0_i32_0 = arith.constant 0 : i32
    %c0_i32_1 = arith.constant 0 : i32
    return %c0_i32, %c0_i32_0 : i32, i32
  }
  func.func @transform_4(%arg0: i32, %arg1: i32) -> (i32, i32) {
    %c0_i32 = arith.constant 0 : i32
    %c0_i32_0 = arith.constant 0 : i32
    %c0_i32_1 = arith.constant 0 : i32
    return %c0_i32, %c0_i32_0 : i32, i32
  }
  func.func @transform_5(%arg0: i32, %arg1: i32) -> (i32, i32) {
    %c0_i32 = arith.constant 0 : i32
    %c0_i32_0 = arith.constant 0 : i32
    %c0_i32_1 = arith.constant 0 : i32
    return %c0_i32, %c0_i32_0 : i32, i32
  }
  func.func @transform_6(%arg0: i32, %arg1: i32) -> (i32, i32, i32) {
    %c0_i32 = arith.constant 0 : i32
    %c0_i32_0 = arith.constant 0 : i32
    return %arg0, %arg1, %c0_i32 : i32, i32, i32
  }
}

</mosaic_0001>

<bundles_post_ra>
// kernel: tpu_custom_call.1
= control target key start
LH: loop header
LB: loop body
LE: loop exit
PB: predicated region body
PF: predicated region fallthrough
CT: control target
= control target key end

     0   :  { %7 = vsyncpa [#allocation3], 0  ;;  %s185_s0 = inlined_call_operand.hbm [shape: f32[8,128], index: 0, kind: input, shape index: {}]   ;;  %s186_s1 = inlined_call_operand.hbm [shape: f32[8,128], index: 1, kind: input, shape index: {}]   ;;  %s187_s2 = inlined_call_operand.hbm [shape: f32[8,128], index: 2, kind: output, shape index: {}]  }
   0x1   :  { %8 = vsyncpa [#allocation6], 0 }
   0x2   :  { %9 = vsyncpa [#allocation4], 0  ;;  %s131_s9 = smov [#allocation2]   ;;  %s132_s11 = smov [#allocation5]  }
   0x3   :  { %s16_s10 = sshll.u32 %s131_s9, 4  ;;  %s26_s12 = sshll.u32 %s132_s11, 4  ;;  %s17_s10 = int_to_ptr.vmem [resolvable:$true] %s16_s10  ;;  %s27_s12 = int_to_ptr.vmem [resolvable:$true] %s26_s12 }
   0x4   :  { %s59_s15 = scalar_lea.hbm %s185_s0, 128 }
   0x5   :  { %p60_p0 = scmp.ne.s32.totalorder %s185_s0, %s59_s15  ;;  %p63_p1 = scmp.lt.u32.totalorder %s59_s15, %s185_s0 }
   0x7   :  { %p65_p2 = pnand %p63_p1, %p60_p0 }
   0x9   :  { %68 = shalt.err (!%p65_p2)
}
   0xa   :  { %s69_s20 = scalar_lea.vmem %s17_s10, 128  ;;  %p74_p4 = scmp.lt.s32.totalorder %s17_s10, %s17_s10 }
   0xb   :  { %p70_p3 = scmp.ne.s32.totalorder %s17_s10, %s69_s20  ;;  %p75_p5 = scmp.lt.s32.totalorder %s69_s20, %s69_s20 }
   0xd   :  { %p76_p6 = por %p75_p5, %p74_p4 }
   0xf   :  { %p77_p7 = pnand %p76_p6, %p70_p3 }
  0x11   :  { %80 = shalt.err (!%p77_p7)
}
  0x12   :  { %19 = dma.hbm_to_vmem [thread:$0]  %s185_s0, 128, %s17_s10, [#allocation3]  }
  0x13   :  { %s81_s25 = scalar_lea.hbm %s186_s1, 128 }
  0x14   :  { %p82_p8 = scmp.ne.s32.totalorder %s186_s1, %s81_s25  ;;  %p85_p9 = scmp.lt.u32.totalorder %s81_s25, %s186_s1 }
  0x16   :  { %p87_p10 = pnand %p85_p9, %p82_p8 }
  0x18   :  { %90 = shalt.err (!%p87_p10)
}
  0x19   :  { %s91_s30 = scalar_lea.vmem %s27_s12, 128  ;;  %p96_p12 = scmp.lt.s32.totalorder %s27_s12, %s27_s12 }
  0x1a   :  { %p92_p11 = scmp.ne.s32.totalorder %s27_s12, %s91_s30  ;;  %p97_p13 = scmp.lt.s32.totalorder %s91_s30, %s91_s30 }
  0x1c   :  { %p98_p0 = por %p97_p13, %p96_p12 }
  0x1e   :  { %p99_p1 = pnand %p98_p0, %p92_p11 }
  0x20   :  { %102 = shalt.err (!%p99_p1)
}
  0x21   :  { %29 = dma.hbm_to_vmem [thread:$0]  %s186_s1, 128, %s27_s12, [#allocation6]  }
  0x22   :  { %125 = dma.done.wait [#allocation3], 128  }
  0x23   :  { %126 = vsyncadd [#allocation3], 4294967168 }
  0x24   :  { %127 = dma.done.wait [#allocation6], 128  }
  0x25   :  { %128 = vsyncadd [#allocation6], 4294967168  ;;  %s133_s4 = smov [#allocation7]   ;;  %v36_v0 = vld [vmem:[#allocation5] sm:$0xff]  ;;  %v37_v1 = vld [vmem:[#allocation2] sm:$0xff] }
  0x26   :  { %s46_s5 = sshll.u32 %s133_s4, 4  ;;  %v38_v2 = vadd.f32 %v37_v1, %v36_v0  ;;  %s47_s5 = int_to_ptr.vmem [resolvable:$true] %s46_s5 }
  0x27   :  { %s103_s6 = scalar_lea.vmem %s47_s5, 128  ;;  %p108_p3 = scmp.lt.s32.totalorder %s47_s5, %s47_s5 }
  0x28   :  { %39 = vst [vmem:[#allocation7] sm:$0xff] %v38_v2  ;;  %p104_p2 = scmp.ne.s32.totalorder %s47_s5, %s103_s6  ;;  %p109_p4 = scmp.lt.s32.totalorder %s103_s6, %s103_s6 }
  0x2a   :  { %p110_p5 = por %p109_p4, %p108_p3 }
  0x2c   :  { %p111_p6 = pnand %p110_p5, %p104_p2 }
  0x2e   :  { %114 = shalt.err (!%p111_p6)
}
  0x2f   :  { %s115_s8 = scalar_lea.hbm %s187_s2, 128 }
  0x30   :  { %p116_p7 = scmp.ne.s32.totalorder %s187_s2, %s115_s8  ;;  %p119_p8 = scmp.lt.u32.totalorder %s115_s8, %s187_s2 }
  0x32   :  { %p121_p9 = pnand %p119_p8, %p116_p7 }
  0x34   :  { %124 = shalt.err (!%p121_p9)
}
  0x35   :  { %49 = dma.vmem_to_hbm [thread:$0]  %s47_s5, 128, %s187_s2, [#allocation4]  }
  0x36   :  { %129 = dma.done.wait [#allocation4], 128  }
  0x37   :  { %130 = vsyncadd [#allocation4], 4294967168 }
  0x38   :  { %53 = vsyncpa [#allocation3], 1 }
  0x39   :  { %54 = vsyncpa [#allocation6], 1 }
  0x3a   :  { %55 = vsyncpa [#allocation4], 1 }

// kernel: tpu_custom_call.1
= control target key start
LH: loop header
LB: loop body
LE: loop exit
PB: predicated region body
PF: predicated region fallthrough
CT: control target
= control target key end

     0   :  { %s3756_s0 = inlined_call_operand.hbm [shape: f32[2,256,128], index: 0, kind: input, shape index: {}]   ;;  %s3757_s1 = inlined_call_operand.hbm [shape: f32[2,1,768], index: 1, kind: input, shape index: {}]   ;;  %s3758_s2 = inlined_call_operand.hbm [shape: bf16[128,384], index: 2, kind: input, shape index: {}]   ;;  %s3759_s3 = inlined_call_operand.hbm [shape: f32[1,128], index: 3, kind: input, shape index: {}]   ;;  %s3760_s4 = inlined_call_operand.hbm [shape: f32[1,128], index: 4, kind: input, shape index: {}]   ;;  %s3761_s5 = inlined_call_operand.hbm [shape: bf16[128,128], index: 5, kind: input, shape index: {}]   ;;  %s3762_s6 = inlined_call_operand.hbm [shape: bf16[2,256,384], index: 6, kind: output, shape index: {}]  }
   0x1   :  { %3772 = sst [smem:[#allocation23_spill]] %s3756_s0 }
   0x2   :  { %3773 = sst [smem:[#allocation24_spill]] %s3757_s1 }
   0x3   :  { %3774 = sst [smem:[#allocation25_spill]] %s3758_s2 }
   0x4   :  { %3775 = sst [smem:[#allocation26_spill]] %s3759_s3 }
   0x5   :  { %3776 = sst [smem:[#allocation27_spill]] %s3760_s4 }
   0x6   :  { %3777 = sst [smem:[#allocation28_spill]] %s3761_s5 }
   0x7   :  { %3778 = sst [smem:[#allocation29_spill]] %s3762_s6 }
   0x8   :  { %11 = vsyncpa [#allocation3], 0 }
   0x9   :  { %13 = vsyncpa [#allocation3 + $0x1], 0 }
   0xa   :  { %14 = vsyncpa [#allocation6], 0 }
   0xb   :  { %16 = vsyncpa [#allocation6 + $0x1], 0 }
   0xc   :  { %17 = vsyncpa [#allocation9], 0 }
   0xd   :  { %18 = vsyncpa [#allocation12], 0 }
   0xe   :  { %19 = vsyncpa [#allocation4], 0 }
   0xf   :  { %21 = vsyncpa [#allocation4 + $0x1], 0  ;;  %s2834_s21 = smov 0   ;;  %s2836_s22 = smov 0  }
  0x10   :  { %s2838_s23 = smov 0   ;;  %s2840_s24 = smov 0  }
  0x11   :  { %s2842_s25 = smov 0   ;;  %s2844_s26 = smov 0  }
  0x12   :  { %s2846_s27 = smov 0   ;;  %s2848_s28 = smov 0  }
  0x13   :  { %s2850_s29 = smov 0   ;;  %s2852_s30 = smov 0  }
  0x14   :  { %s2854_s7 = smov 0  }
  0x15 LB: > { %3779 = sst [smem:[#allocation20_spill]] %s2765_s27  ;;  %s2890_s8 = sadd.s32 4294967295, %s2781_s7   ;;  %s2781_s7 = sphi %s2854_s7, %s27_s7   ;;  %s2777_s30 = sphi %s2852_s30, %s3828_s30   ;;  %s2773_s29 = sphi %s2850_s29, %s3827_s29   ;;  %s2769_s28 = sphi %s2848_s28, %s3826_s28   ;;  %s2765_s27 = sphi %s2846_s27, %s3825_s27   ;;  %s2761_s26 = sphi %s2844_s26, %s3824_s26   ;;  %s2757_s25 = sphi %s2842_s25, %s3823_s25   ;;  %s2753_s24 = sphi %s2840_s24, %s3822_s24   ;;  %s2749_s23 = sphi %s2838_s23, %s3821_s23   ;;  %s2745_s22 = sphi %s2836_s22, %s3820_s22   ;;  %s2741_s21 = sphi %s2834_s21, %s3819_s21  }
  0x16   : > { %3780 = sst [smem:[#allocation21_spill]] %s2769_s28  ;;  %p1860_p0 = scmp.ge.s32.totalorder %s2781_s7, 1 }
  0x17   : > { %p3764_p1 = scmp.eq.s32.totalorder %s2890_s8, 0  ;;  %p210_p3 = scmp.lt.s32.totalorder %s2781_s7, 5 }
  0x18   : > { %s2783_s10 = smov [#allocation7]   ;;  %s2784_s13 = smov [#allocation8]  }
  0x19   : > { %p2896_p4 = pnand %p1860_p0, %p210_p3  ;;  %s222_s11 = sshll.u32 %s2783_s10, 4  ;;  %s2900_s11 = int_to_ptr.vmem [resolvable:$true] %s222_s11 }
  0x1a   : > { %s236_s14 = sshll.u32 %s2784_s13, 4  ;;  %s2785_s15 = smov [#allocation10]   ;;  %s2910_s14 = int_to_ptr.vmem [resolvable:$true] %s236_s14 }
  0x1b   : > { %s3781_s9 = scalar_select %p2896_p4, 1, 0 }
  0x1c   : > { %p2200_p5 = pneg %p2896_p4  ;;  %s247_s16 = sshll.u32 %s2785_s15, 4  ;;  %s2912_s16 = int_to_ptr.vmem [resolvable:$true] %s247_s16 }
  0x1d   : > { %3782 = sst [smem:[#allocation22_spill]] %s3781_s9  ;;  %s3784_s2 = sld [smem:[#allocation25_spill]] }
  0x1e   : > { %p2906_p6 = pnand %p2200_p5, %p3764_p1 }
  0x20   : > { %p2922_p8 = pneg %p2906_p6 }
  0x23   : > { %s2471_s19 = scalar_lea.hbm %s3784_s2, 3072 }
  0x24   : > { %p2472_p7 = scmp.ne.s32.totalorder %s3784_s2, %s2471_s19  ;;  %p2478_p11 = scmp.lt.u32.totalorder %s2471_s19, %s3784_s2 }
  0x26   : > { %p2474_p9 = pnand %p2922_p8, %p2472_p7 }
  0x28   : > { %p2475_p10 = pneg %p2474_p9 }
  0x2a   : > { %p2480_p12 = pnand %p2478_p11, %p2475_p10 }
  0x2c   : > { %2483 = shalt.err (!%p2480_p12)
}
  0x2d   : > { %s2484_s17 = scalar_lea.vmem %s2900_s11, 3072  ;;  %p2492_p5 = scmp.lt.s32.totalorder %s2900_s11, %s2900_s11 }
  0x2e   : > { %p2485_p13 = scmp.ne.s32.totalorder %s2900_s11, %s2484_s17  ;;  %p2493_p1 = scmp.lt.s32.totalorder %s2484_s17, %s2484_s17 }
  0x30   : > { %p2487_p0 = pnand %p2485_p13, %p2922_p8  ;;  %p2494_p7 = por %p2493_p1, %p2492_p5 }
  0x32   : > { %p2488_p3 = pneg %p2487_p0 }
  0x34   : > { %p2495_p9 = pnand %p2494_p7, %p2488_p3 }
  0x36   : > { %2498 = shalt.err (!%p2495_p9)
}
  0x37   : > { %s2786_s18 = smov 192   ;;  %s2787_s19 = smov 12  }
  0x38   : > { %2203 = dma.hbm_to_vmem [thread:$0]  (!%p2906_p6), %s3784_s2, 3072, %s2900_s11, [#allocation6], %s2786_s18, %s2786_s18, %s2787_s19  }
  0x39   : > { %s3786_s3 = sld [smem:[#allocation26_spill]] }
  0x3f   : > { %s2499_s28 = scalar_lea.hbm %s3786_s3, 16 }
  0x40   : > { %p2500_p1 = scmp.ne.s32.totalorder %s3786_s3, %s2499_s28  ;;  %p2506_p12 = scmp.lt.u32.totalorder %s2499_s28, %s3786_s3 }
  0x42   : > { %p2502_p10 = pnand %p2500_p1, %p2922_p8 }
  0x44   : > { %p2503_p11 = pneg %p2502_p10 }
  0x46   : > { %p2508_p13 = pnand %p2506_p12, %p2503_p11 }
  0x48   : > { %2511 = shalt.err (!%p2508_p13)
}
  0x49   : > { %s2512_s11 = scalar_lea.vmem %s2910_s14, 16  ;;  %s2519_s27 = scalar_lea.vmem %s2910_s14, 32 }
  0x4a   : > { %p2513_p0 = scmp.ne.s32.totalorder %s2910_s14, %s2512_s11  ;;  %p2520_p7 = scmp.lt.s32.totalorder %s2910_s14, %s2910_s14 }
  0x4b   : > { %p2521_p9 = scmp.lt.s32.totalorder %s2519_s27, %s2512_s11 }
  0x4c   : > { %p2515_p3 = pnand %p2513_p0, %p2922_p8 }
  0x4d   : > { %p2522_p1 = por %p2521_p9, %p2520_p7 }
  0x4e   : > { %p2516_p5 = pneg %p2515_p3 }
  0x50   : > { %p2523_p10 = pnand %p2522_p1, %p2516_p5 }
  0x52   : > { %2526 = shalt.err (!%p2523_p10)
}
  0x53   : > { %2206 = dma.hbm_to_vmem [thread:$0]  (!%p2906_p6), %s3786_s3, 16, %s2910_s14, [#allocation9]  }
  0x54   : > { %s3787_s4 = sld [smem:[#allocation27_spill]] }
  0x5a   : > { %s2527_s19 = scalar_lea.hbm %s3787_s4, 16 }
  0x5b   : > { %p2528_p11 = scmp.ne.s32.totalorder %s3787_s4, %s2527_s19  ;;  %p2534_p0 = scmp.lt.u32.totalorder %s2527_s19, %s3787_s4 }
  0x5d   : > { %p2530_p12 = pnand %p2528_p11, %p2922_p8 }
  0x5f   : > { %p2531_p13 = pneg %p2530_p12 }
  0x61   : > { %p2536_p3 = pnand %p2534_p0, %p2531_p13 }
  0x63   : > { %2539 = shalt.err (!%p2536_p3)
}
  0x64   : > { %s2540_s14 = scalar_lea.vmem %s2912_s16, 16  ;;  %s2547_s17 = scalar_lea.vmem %s2912_s16, 32 }
  0x65   : > { %p2541_p5 = scmp.ne.s32.totalorder %s2912_s16, %s2540_s14  ;;  %p2548_p1 = scmp.lt.s32.totalorder %s2912_s16, %s2912_s16 }
  0x66   : > { %p2549_p10 = scmp.lt.s32.totalorder %s2547_s17, %s2540_s14 }
  0x67   : > { %p2543_p7 = pnand %p2541_p5, %p2922_p8 }
  0x68   : > { %p2550_p11 = por %p2549_p10, %p2548_p1 }
  0x69   : > { %p2544_p9 = pneg %p2543_p7 }
  0x6b   : > { %p2551_p12 = pnand %p2550_p11, %p2544_p9 }
  0x6d   : > { %2554 = shalt.err (!%p2551_p12)
}
  0x6e   : > { %2209 = dma.hbm_to_vmem [thread:$0]  (!%p2906_p6), %s3787_s4, 16, %s2912_s16, [#allocation9]  }
  0x6f   : > { %s2788_s1 = smov [#allocation11]   ;;  %s3788_s5 = sld [smem:[#allocation28_spill]] }
  0x70   : > { %s257_s28 = sshll.u32 %s2788_s1, 4  ;;  %s258_s28 = int_to_ptr.vmem [resolvable:$true] %s257_s28 }
  0x75   : > { %s2555_s19 = scalar_lea.hbm %s3788_s5, 1024 }
  0x76   : > { %p2556_p13 = scmp.ne.s32.totalorder %s3788_s5, %s2555_s19  ;;  %p2562_p5 = scmp.lt.u32.totalorder %s2555_s19, %s3788_s5 }
  0x78   : > { %p2558_p0 = pnand %p2556_p13, %p2922_p8 }
  0x7a   : > { %p2559_p3 = pneg %p2558_p0 }
  0x7c   : > { %p2564_p7 = pnand %p2562_p5, %p2559_p3 }
  0x7e   : > { %2567 = shalt.err (!%p2564_p7)
}
  0x7f   : > { %s2568_s16 = scalar_lea.vmem %s258_s28, 1024  ;;  %p2576_p11 = scmp.lt.s32.totalorder %s258_s28, %s258_s28 }
  0x80   : > { %p2569_p9 = scmp.ne.s32.totalorder %s258_s28, %s2568_s16  ;;  %p2577_p12 = scmp.lt.s32.totalorder %s2568_s16, %s2568_s16 }
  0x82   : > { %p2571_p1 = pnand %p2569_p9, %p2922_p8  ;;  %p2578_p2 = por %p2577_p12, %p2576_p11 }
  0x84   : > { %p2572_p10 = pneg %p2571_p1 }
  0x86   : > { %p2579_p4 = pnand %p2578_p2, %p2572_p10 }
  0x88   : > { %2582 = shalt.err (!%p2579_p4)
}
  0x89   : > { %s2789_s14 = smov 64   ;;  %s2790_s6 = smov 4  }
  0x8a   : > { %2212 = dma.hbm_to_vmem [thread:$0]  (!%p2906_p6), %s3788_s5, 1024, %s258_s28, [#allocation12], %s2789_s14, %s2789_s14, %s2790_s6  }
  0x8b   : > { %s1859_s27 = sadd.s32 4294967294, %s2781_s7   ;;  %s36_s1 = sadd.s32 1, %s2773_s29 }
  0x8c   : > { %s39_s9 = sadd.s32 1, %s2777_s30  ;;  %p37_p2 = scmp.ge.s32.totalorder %s36_s1, 2 }
  0x8d   : > { %s48_s18 = sadd.s32 1, %s2761_s26  ;;  %p55_p4 = scmp.ne.s32.totalorder %s2761_s26, %s2757_s25 }
  0x8e   : > { %p3769_p8 = scmp.eq.s32.totalorder %s2781_s7, 0  ;;  %s3830_s1 = smov (%p37_p2, %s36_s1), 0 }
  0x8f   : > { %s3832_s9 = smov (!%p37_p2, %s39_s9), %s2777_s30  ;;  %s44_s12 = ssub.s32 %s2773_s29, %s3830_s1 }
  0x90   : > { %p3023_p13 = por %p3769_p8, %p55_p4  ;;  %p41_p6 = scmp.ge.s32.totalorder %s3832_s9, 2 }
  0x91   : > { %p61_p0 = scmp.ne.s32.totalorder %s2757_s25, %s2753_s24  ;;  %p3790_p3 = scmp.eq.s32.totalorder %s2890_s8, 3 }
  0x92   : > { %p203_p7 = scmp.eq.s32.totalorder %s1859_s27, 3  ;;  %s3834_s9 = smov (%p41_p6, %s3832_s9), 0 }
  0x93   : > { %p3031_p5 = por %p3790_p3, %p55_p4  ;;  %p3792_p9 = scmp.eq.s32.totalorder %s2890_s8, 0 }
  0x94   : > { %p3043_p10 = por %p203_p7, %p61_p0  ;;  %s3049_s13 = ssub.s32 %s2777_s30, %s3834_s9 }
  0x95   : > { %s3791_s19 = scalar_select %p3031_p5, 1, 0 }
  0x96   : > { %p3039_p1 = por %p3792_p9, %p61_p0  ;;  %p3768_p11 = scmp.lt.s32.totalorder %s2781_s7, 4 }
  0x97   : > { %s3794_s10 = scalar_select %p3043_p10, 1, 0 }
  0x98   : > { %s45_s15 = sor.u32 %s44_s12, %s3049_s13  ;;  %s271_s16 = sand.u32 1, %s2761_s26  }
  0x99   : > { %p46_p2 = scmp.eq.s32.totalorder %s45_s15, 0  ;;  %s1866_s14 = sshll.u32 %s271_s16, 7 }
  0x9a   : > { %s1867_s17 = sshll.u32 %s2773_s29, 4  ;;  %s1868_s11 = sshll.u32 %s2777_s30, 5 }
  0x9b   : > { %s3056_s6 = scalar_select %p46_p2, %s2761_s26, %s48_s18  }
  0x9c   : > { %s275_s27 = scalar_lea.vmem [#allocation2], %s1866_s14  ;;  %s281_s3 = sadd.s32 %s1868_s11, %s1867_s17 }
  0x9d   : > { %s284_s2 = sshll.u32 %s275_s27, 4  ;;  %s1869_s4 = sshll.u32 %s281_s3, 7  ;;  %s3060_s2 = int_to_ptr.vmem [resolvable:$true] %s284_s2 }
  0x9e   : > { %p3066_p4 = pnand %p3768_p11, %p3023_p13  ;;  %s3796_s0 = sld [smem:[#allocation23_spill]] }
  0x9f   : > { %s3075_s14 = scalar_lea.sflag [#allocation3], %s271_s16 }
  0xa0   : > { %p2585_p13 = pneg %p3066_p4 }
  0xa4   : > { %s3073_s18 = scalar_lea.hbm %s3796_s0, %s1869_s4  ;;  %s2588_s11 = scalar_lea.hbm %s3796_s0, 8192 }
  0xa5   : > { %s2583_s3 = scalar_lea.hbm %s3073_s18, 2048  ;;  %p2589_p7 = scmp.lt.u32.totalorder %s3073_s18, %s3796_s0 }
  0xa6   : > { %p2584_p6 = scmp.ne.s32.totalorder %s3073_s18, %s2583_s3  ;;  %p2590_p9 = scmp.lt.u32.totalorder %s2588_s11, %s2583_s3 }
  0xa7   : > { %p2592_p11 = scmp.lt.u32.totalorder %s2583_s3, %s3073_s18 }
  0xa8   : > { %p2586_p0 = pnand %p2585_p13, %p2584_p6  ;;  %p2591_p2 = por %p2590_p9, %p2589_p7 }
  0xaa   : > { %p2587_p3 = pneg %p2586_p0  ;;  %p2593_p8 = por %p2592_p11, %p2591_p2 }
  0xac   : > { %p2594_p12 = pnand %p2593_p8, %p2587_p3 }
  0xae   : > { %2597 = shalt.err (!%p2594_p12)
}
  0xaf   : > { %s2598_s16 = scalar_lea.vmem %s3060_s2, 2048  ;;  %s2791_s12 = smov [#allocation2]  }
  0xb0   : > { %p2599_p6 = scmp.ne.s32.totalorder %s3060_s2, %s2598_s16  ;;  %s2603_s15 = sshll.u32 %s2791_s12, 4  ;;  %s2604_s15 = int_to_ptr.vmem [resolvable:$false] %s2603_s15 }
  0xb1   : > { %s2605_s28 = scalar_lea.vmem %s2604_s15, 4096  ;;  %p2606_p5 = scmp.lt.s32.totalorder %s3060_s2, %s2604_s15 }
  0xb2   : > { %p2601_p0 = pnand %p2599_p6, %p2585_p13  ;;  %p2607_p7 = scmp.lt.s32.totalorder %s2605_s28, %s2598_s16 }
  0xb4   : > { %p2602_p10 = pneg %p2601_p0  ;;  %p2608_p9 = por %p2607_p7, %p2606_p5 }
  0xb6   : > { %p2609_p11 = pnand %p2608_p9, %p2602_p10 }
  0xb8   : > { %2612 = shalt.err (!%p2609_p11)
}
  0xb9   : > { %s2792_s3 = smov 128   ;;  %s2793_s17 = smov 8  }
  0xba   : > { %2216 = dma.hbm_to_vmem [thread:$0]  (!%p3066_p4), %s3073_s18, 2048, %s3060_s2, %s3075_s14, %s2792_s3, %s2792_s3, %s2793_s17  }
  0xbb   : > { %s74_s11 = sadd.s32 1, %s2749_s23  ;;  %p81_p8 = scmp.ne.s32.totalorder %s2749_s23, %s2745_s22 }
  0xbc   : > { %p3797_p5 = scmp.eq.s32.totalorder %s3049_s13, 0  ;;  %p3798_p10 = scmp.eq.s32.totalorder %s2781_s7, 0 }
  0xbd   : > { %p87_p13 = scmp.ne.s32.totalorder %s2745_s22, %s2741_s21  ;;  %s294_s27 = sand.u32 1, %s2781_s7  }
  0xbe   : > { %s3109_s4 = scalar_select %p3797_p5, %s2749_s23, %s74_s11  }
  0xbf   : > { %p83_p12 = por %p81_p8, %p3798_p10  ;;  %s296_s16 = sand.u32 1, %s2749_s23  }
  0xc0   : > { %p3799_p3 = scmp.eq.s32.totalorder %s2890_s8, 0  ;;  %s2172_s15 = smul.u32 6, %s296_s16 }
  0xc1   : > { %p3801_p6 = scmp.lt.s32.totalorder %s2781_s7, 4  ;;  %s2173_s2 = smul.u32 96, %s2777_s30 }
  0xc2   : > { %p3119_p2 = por %p87_p13, %p3799_p3  ;;  %s3803_s14 = sld [smem:[#allocation24_spill]] }
  0xc3   : > { %p3125_p0 = pnand %p3801_p6, %p83_p12  ;;  %s298_s28 = scalar_lea.vmem [#allocation5], %s2172_s15 }
  0xc4   : > { %s3800_s12 = scalar_select %p3119_p2, 1, 0 }
  0xc5   : > { %s306_s3 = sshll.u32 %s298_s28, 4  ;;  %s295_s17 = scalar_lea.sflag [#allocation6], %s294_s27  ;;  %s3135_s3 = int_to_ptr.vmem [resolvable:$true] %s306_s3 }
  0xc6   : > { %p2615_p7 = pneg %p3125_p0 }
  0xc8   : > { %s3133_s21 = scalar_lea.hbm %s3803_s14, %s2173_s2  ;;  %s2618_s13 = scalar_lea.hbm %s3803_s14, 192 }
  0xc9   : > { %s2613_s11 = scalar_lea.hbm %s3133_s21, 96  ;;  %p2619_p8 = scmp.lt.u32.totalorder %s3133_s21, %s3803_s14 }
  0xca   : > { %p2614_p4 = scmp.ne.s32.totalorder %s3133_s21, %s2613_s11  ;;  %p2620_p5 = scmp.lt.u32.totalorder %s2618_s13, %s2613_s11 }
  0xcb   : > { %p2622_p12 = scmp.lt.u32.totalorder %s2613_s11, %s3133_s21 }
  0xcc   : > { %p2616_p9 = pnand %p2615_p7, %p2614_p4  ;;  %p2621_p10 = por %p2620_p5, %p2619_p8 }
  0xce   : > { %p2617_p11 = pneg %p2616_p9  ;;  %p2623_p13 = por %p2622_p12, %p2621_p10 }
  0xd0   : > { %p2624_p3 = pnand %p2623_p13, %p2617_p11 }
  0xd2   : > { %2627 = shalt.err (!%p2624_p3)
}
  0xd3   : > { %s2628_s27 = scalar_lea.vmem %s3135_s3, 96  ;;  %s2794_s15 = smov [#allocation5]  }
  0xd4   : > { %p2629_p6 = scmp.ne.s32.totalorder %s3135_s3, %s2628_s27  ;;  %s2633_s28 = sshll.u32 %s2794_s15, 4  ;;  %s2634_s28 = int_to_ptr.vmem [resolvable:$false] %s2633_s28 }
  0xd5   : > { %s2635_s0 = scalar_lea.vmem %s2634_s28, 192  ;;  %p2636_p2 = scmp.lt.s32.totalorder %s3135_s3, %s2634_s28 }
  0xd6   : > { %p2631_p4 = pnand %p2629_p6, %p2615_p7  ;;  %p2637_p8 = scmp.lt.s32.totalorder %s2635_s0, %s2628_s27 }
  0xd8   : > { %p2632_p9 = pneg %p2631_p4  ;;  %p2638_p5 = por %p2637_p8, %p2636_p2 }
  0xda   : > { %p2639_p10 = pnand %p2638_p5, %p2632_p9 }
  0xdc   : > { %2642 = shalt.err (!%p2639_p10)
}
  0xdd   : > { %2219 = dma.hbm_to_vmem [thread:$0]  (!%p3125_p0), %s3133_s21, 96, %s3135_s3, %s295_s17  }
  0xde   : > { %s3804_s11 = sld [smem:[#allocation22_spill]] }
  0xe4   : > { %p3805_p11 = scmp.ne.s32.totalorder %s3804_s11, 0 }
  0xe5   : > { %s3165_s16 = sand.u32 (!%p3805_p11), 1, %s2757_s25  }
  0xe6   : > { %315 = sbr.rel (%p3805_p11) target bundleno = 1109 (0x455), region = 44  ;;  %s1872_s2 = sshll.u32 (!%p3805_p11), %s3165_s16, 7 }
  0xe7   : > { %s318_s13 = scalar_lea.sflag (!%p3805_p11), [#allocation3], %s3165_s16  ;;  %s3169_s18 = scalar_lea.vmem (!%p3805_p11), [#allocation2], %s1872_s2 }
  0xed   : > { %2716 = dma.done.wait (%p3039_p1), %s318_s13, 2048  }
  0xee   : > { %2718 = vsyncadd (%p3039_p1), %s318_s13, 4294965248  ;;  %s326_s5 = sand.u32 1, %s2890_s8   ;;  %s328_s21 = sand.u32 1, %s2745_s22  }
  0xef   : > { %s3177_s3 = smul.u32 6, %s328_s21  ;;  %s327_s17 = scalar_lea.sflag [#allocation6], %s326_s5 }
  0xf0   : > { %p3806_p2 = scmp.ne.s32.totalorder %s3800_s12, 0 }
  0xf1   : > { %s330_s27 = scalar_lea.vmem [#allocation5], %s3177_s3 }
  0xf2   : > { %2720 = dma.done.wait (%p3806_p2), %s327_s17, 96  }
  0xf3   : > { %2722 = vsyncadd (%p3806_p2), %s327_s17, 4294967200  ;;  %p3807_p0 = scmp.eq.s32.totalorder %s2890_s8, 0 }
  0xf5   : > { %2724 = dma.done.wait (%p3807_p0), [#allocation6], 3072   ;;  %p3808_p1 = pmov %p3807_p0 }
  0xf6   : > { %p3809_p7 = pmov %p3807_p0 }
  0xf7   : > { %2726 = vsyncadd (%p3808_p1), [#allocation6], 4294964224 }
  0xf8   : > { %2728 = dma.done.wait (%p3809_p7), [#allocation9], 32   ;;  %p3810_p12 = pmov %p3807_p0 }
  0xf9   : > { %p3811_p13 = pmov %p3807_p0 }
  0xfa   : > { %2730 = vsyncadd (%p3810_p12), [#allocation9], 4294967264 }
  0xfb   : > { %2732 = dma.done.wait (%p3811_p13), [#allocation12], 1024   ;;  %p3812_p3 = pmov %p3807_p0 }
  0xfc   : > { %v383_v0 = vld [vmem:[%s3169_s18] sm:$0xff]  ;;  %v385_v1 = vld [vmem:[%s3169_s18 + $0x10] sm:$0xff]  ;;  %v384_v2 = vld [vmem:[%s3169_s18 + $0x8] sm:$0xff]  ;;  %s2175_s8 = smul.u32 192, %s3165_s16  ;;  %s3813_s12 = sld [smem:[#allocation20_spill]] }
  0xfd   : > { %2734 = vsyncadd (%p3812_p3), [#allocation12], 4294966272  ;;  %400 = vadd.xlane.f32.xlu0 %v383_v0  ;;  %404 = vadd.xlane.f32.xlu1 %v385_v1  ;;  %v386_v3 = vld [vmem:[%s3169_s18 + $0x18] sm:$0xff]  ;;  %v387_v4 = vld [vmem:[%s3169_s18 + $0x20] sm:$0xff]  ;;  %s3814_s15 = sld [smem:[#allocation21_spill]]  ;;  %s3815_s21 = sld [smem:[#allocation29_spill]] }
  0xfe   : > { %v388_v5 = vld [vmem:[%s3169_s18 + $0x28] sm:$0xff]  ;;  %v389_v6 = vld [vmem:[%s3169_s18 + $0x30] sm:$0xff]  ;;  %v3204_v7 = vld [vmem:[%s3169_s18 + $0x38] sm:$0xff]  ;;  %s3440_s20 = scalar_lea.vmem [#allocation13], %s2175_s8  ;;  %p3817_p4 = scmp.ne.s32.totalorder %s3791_s19, 0 }
  0xff   : > { %v3207_v8 = vld [vmem:[%s3169_s18 + $0x40] sm:$0xff]  ;;  %v3210_v9 = vld [vmem:[%s3169_s18 + $0x48] sm:$0xff]  ;;  %v3214_v10 = vld [vmem:[%s3169_s18 + $0x50] sm:$0xff]  ;;  %s1707_s2 = sshll.u32 %s3440_s20, 4  ;;  %s3685_s2 = int_to_ptr.vmem [resolvable:$true] %s1707_s2 }
 0x100   : > { %v3217_v11 = vld [vmem:[%s3169_s18 + $0x58] sm:$0xff]  ;;  %v3224_v12 = vld [vmem:[%s3169_s18 + $0x60] sm:$0xff]  ;;  %v3227_v13 = vld [vmem:[%s3169_s18 + $0x68] sm:$0xff]  ;;  %s2643_s8 = scalar_lea.vmem %s3685_s2, 3072 }
 0x101   : > { %402 = vadd.xlane.f32.xlu0 %v384_v2  ;;  %406 = vadd.xlane.f32.xlu1 %v386_v3  ;;  %v3232_v14 = vld [vmem:[%s3169_s18 + $0x70] sm:$0xff]  ;;  %v3235_v15 = vld [vmem:[%s3169_s18 + $0x78] sm:$0xff]  ;;  %p2644_p6 = scmp.ne.s32.totalorder %s3685_s2, %s2643_s8 }
 0x102   : > { %v2335_v16 = vld [vmem:[#allocation7 + $0x4] ss:$12 sps:$4 sm:$0xff]   ;;  %v2337_v17 = vld [vmem:[#allocation7] ss:$12 sps:$4 sm:$0xff]   ;;  %v2338_v18 = vld [vmem:[#allocation7 + $0x1c] ss:$12 sps:$4 sm:$0xff]  }
 0x103   : > { %v2340_v19 = vld [vmem:[#allocation7 + $0x8] ss:$12 sps:$4 sm:$0xff]   ;;  %792 = vmatprep.subr.bf16.mxu0 %v2335_v16  ;;  %v2341_v58 = vld [vmem:[#allocation7 + $0x18] ss:$12 sps:$4 sm:$0xff]   ;;  %s2176_s28 = smul.u32 48, %s3813_s12  ;;  %s3816_s3 = smov %s3815_s21 }
 0x104   : > { %793 = vmatpush1.bf16.msra.mxu0 %v2337_v17  ;;  %2060 = vmatprep.subr.bf16.mxu1 %v2340_v19  ;;  %s2177_s0 = smul.u32 96, %s3814_s15  ;;  %p2645_p9 = pnand %p2644_p6, %p3817_p4 }
 0x105   : > { %408 = vadd.xlane.f32.xlu0 %v387_v4  ;;  %410 = vadd.xlane.f32.xlu1 %v388_v5  ;;  %s2796_s12 = smov [#allocation13]  }
 0x106   : > { %794 = vmatprep.subr.bf16.mxu0 %v2338_v18  ;;  %2061 = vmatpush3.bf16.msra.mxu1 %v2340_v19  ;;  %v2346_v18 = vld [vmem:[#allocation7 + $0x4c] ss:$12 sps:$4 sm:$0xff]   ;;  %s1704_s11 = sadd.s32 %s2177_s0, %s2176_s28  ;;  %p2646_p8 = pneg %p2645_p9 }
 0x107   : > { %v2348_v19 = vld [vmem:[#allocation7 + $0x38] ss:$12 sps:$4 sm:$0xff]   ;;  %s1961_s13 = sshll.u32 %s1704_s11, 6  ;;  %s2647_s15 = sshll.u32 %s2796_s12, 4  ;;  %s2648_s15 = int_to_ptr.vmem [resolvable:$false] %s2647_s15 }
 0x108   : > { %795 = vmatpush1.bf16.msra.mxu0 %v2341_v58  ;;  %s3691_s17 = scalar_lea.hbm %s3815_s21, %s1961_s13  ;;  %s2649_s28 = scalar_lea.vmem %s2648_s15, 6144 }
 0x109   : > { %412 = vadd.xlane.f32.xlu0 %v389_v6  ;;  %414 = vadd.xlane.f32.xlu1 %v3204_v7  ;;  %p2650_p5 = scmp.lt.s32.totalorder %s3685_s2, %s2648_s15  ;;  %p2651_p10 = scmp.lt.s32.totalorder %s2649_s28, %s2643_s8 }
 0x10b   : > { %p2652_p11 = por %p2651_p10, %p2650_p5 }
 0x10d   : > { %416 = vadd.xlane.f32.xlu0 %v3207_v8  ;;  %418 = vadd.xlane.f32.xlu1 %v3210_v9  ;;  %p2653_p2 = pnand %p2652_p11, %p2646_p8 }
 0x111   : > { %420 = vadd.xlane.f32.xlu0 %v3214_v10  ;;  %422 = vadd.xlane.f32.xlu1 %v3217_v11 }
 0x115   : > { %424 = vadd.xlane.f32.xlu0 %v3224_v12  ;;  %426 = vadd.xlane.f32.xlu1 %v3227_v13 }
 0x119   : > { %428 = vadd.xlane.f32.xlu0 %v3232_v14  ;;  %430 = vadd.xlane.f32.xlu1 %v3235_v15 }
 0x18a   : > { %v401_v20 = vpop.xlane.xlu0 %400  ;;  %v405_v21 = vpop.xlane.xlu1 %404 }
 0x18b   : > { %v433_v22 = vmul.f32 0.0078125, %v401_v20  ;;  %v435_v23 = vmul.f32 0.0078125, %v405_v21 }
 0x18d   : > { %v3239_v24 = vsub.f32 %v383_v0, %v433_v22  ;;  %v3241_v25 = vsub.f32 %v385_v1, %v435_v23  ;;  %v2342_v0 = vld [vmem:[#allocation7 + $0x34] ss:$12 sps:$4 sm:$0xff]  }
 0x18e   : > { %v403_v26 = vpop.xlane.xlu0 %402  ;;  %v407_v27 = vpop.xlane.xlu1 %406  ;;  %v2344_v1 = vld [vmem:[#allocation7 + $0x20] ss:$12 sps:$4 sm:$0xff]   ;;  %796 = vmatprep.subr.bf16.mxu0 %v2342_v0  ;;  %v2349_v22 = vld [vmem:[#allocation7 + $0x48] ss:$12 sps:$4 sm:$0xff]  }
 0x18f   : > { %v434_v28 = vmul.f32 0.0078125, %v403_v26  ;;  %v465_v29 = vmul.f32 %v3239_v24, %v3239_v24  ;;  %v436_v30 = vmul.f32 0.0078125, %v407_v27  ;;  %v467_v33 = vmul.f32 %v3241_v25, %v3241_v25  ;;  %2062 = vmatprep.subr.bf16.mxu1 %v2344_v1 }
 0x190   : > { %2063 = vmatpush3.bf16.msra.mxu1 %v2344_v1 }
 0x191   : > { %v3245_v31 = vsub.f32 %v384_v2, %v434_v28  ;;  %481 = vadd.xlane.f32.xlu0 %v465_v29  ;;  %v3247_v32 = vsub.f32 %v386_v3, %v436_v30  ;;  %2064 = vmatprep.subr.bf16.mxu1 %v2348_v19  ;;  %v2350_v29 = vld [vmem:[#allocation7 + $0x64] ss:$12 sps:$4 sm:$0xff]  }
 0x192   : > { %v409_v34 = vpop.xlane.xlu0 %408  ;;  %v411_v35 = vpop.xlane.xlu1 %410  ;;  %v2352_v30 = vld [vmem:[#allocation7 + $0x50] ss:$12 sps:$4 sm:$0xff]  }
 0x193   : > { %v437_v36 = vmul.f32 0.0078125, %v409_v34  ;;  %v466_v37 = vmul.f32 %v3245_v31, %v3245_v31  ;;  %v438_v38 = vmul.f32 0.0078125, %v411_v35  ;;  %v468_v41 = vmul.f32 %v3247_v32, %v3247_v32  ;;  %v2356_v35 = vld [vmem:[#allocation7 + $0x68] ss:$12 sps:$4 sm:$0xff]  }
 0x194   : > { %2065 = vmatpush3.bf16.msra.mxu1 %v2348_v19 }
 0x195   : > { %v3253_v39 = vsub.f32 %v387_v4, %v437_v36  ;;  %485 = vadd.xlane.f32.xlu0 %v467_v33  ;;  %483 = vadd.xlane.f32.xlu1 %v466_v37  ;;  %v3255_v40 = vsub.f32 %v388_v5, %v438_v38  ;;  %v2353_v33 = vld [vmem:[#allocation7 + $0x60] ss:$12 sps:$4 sm:$0xff]   ;;  %v2357_v36 = vld [vmem:[#allocation7 + $0x78] ss:$12 sps:$4 sm:$0xff]  }
 0x196   : > { %v413_v42 = vpop.xlane.xlu0 %412  ;;  %v415_v43 = vpop.xlane.xlu1 %414  ;;  %2066 = vmatprep.subr.bf16.mxu1 %v2352_v30  ;;  %v2358_v37 = vld [vmem:[#allocation7 + $0x94] ss:$12 sps:$4 sm:$0xff]  }
 0x197   : > { %v439_v44 = vmul.f32 0.0078125, %v413_v42  ;;  %v469_v45 = vmul.f32 %v3253_v39, %v3253_v39  ;;  %v440_v46 = vmul.f32 0.0078125, %v415_v43  ;;  %v470_v49 = vmul.f32 %v3255_v40, %v3255_v40  ;;  %v2360_v38 = vld [vmem:[#allocation7 + $0x80] ss:$12 sps:$4 sm:$0xff]   ;;  %v2364_v43 = vld [vmem:[#allocation7 + $0x98] ss:$12 sps:$4 sm:$0xff]  }
 0x198   : > { %2067 = vmatpush3.bf16.msra.mxu1 %v2352_v30  ;;  %v2362_v42 = vld [vmem:[#allocation7 + $0xac] ss:$12 sps:$4 sm:$0xff]  }
 0x199   : > { %v3261_v47 = vsub.f32 %v389_v6, %v439_v44  ;;  %487 = vadd.xlane.f32.xlu1 %v468_v41  ;;  %489 = vadd.xlane.f32.xlu0 %v469_v45  ;;  %v3264_v48 = vsub.f32 %v3204_v7, %v440_v46  ;;  %v2345_v7 = vld [vmem:[#allocation7 + $0x30] ss:$12 sps:$4 sm:$0xff]   ;;  %v2365_v44 = vld [vmem:[#allocation7 + $0xa8] ss:$12 sps:$4 sm:$0xff]   ;;  %v2795_v46 = vmov 0  }
 0x19a   : > { %v417_v50 = vpop.xlane.xlu0 %416  ;;  %v419_v51 = vpop.xlane.xlu1 %418  ;;  %797 = vmatpush1.bf16.msra.mxu0 %v2345_v7  ;;  %2068 = vmatprep.subr.bf16.mxu1 %v2356_v35  ;;  %v2361_v41 = vld [vmem:[#allocation7 + $0x90] ss:$12 sps:$4 sm:$0xff]  }
 0x19b   : > { %v441_v52 = vmul.f32 0.0078125, %v417_v50  ;;  %v471_v53 = vmul.f32 %v3261_v47, %v3261_v47  ;;  %v442_v54 = vmul.f32 0.0078125, %v419_v51  ;;  %v472_v57 = vmul.f32 %v3264_v48, %v3264_v48  ;;  %798 = vmatprep.subr.bf16.mxu0 %v2346_v18  ;;  %v2366_v45 = vld [vmem:[#allocation7 + $0xb0] ss:$12 sps:$4 sm:$0xff]   ;;  %824 = vmatprep.mubr.bf16.mxu0 %v2795_v46 }
 0x19c   : > { %2069 = vmatpush3.bf16.msra.mxu1 %v2356_v35 }
 0x19d   : > { %v3271_v55 = vsub.f32 %v3207_v8, %v441_v52  ;;  %491 = vadd.xlane.f32.xlu1 %v470_v49  ;;  %493 = vadd.xlane.f32.xlu0 %v471_v53  ;;  %v3274_v56 = vsub.f32 %v3210_v9, %v442_v54  ;;  %v3313_v49 = vld [vmem:[#allocation11] sm:$0xff]  }
 0x19e   : > { %v421_v59 = vpop.xlane.xlu0 %420  ;;  %v423_v60 = vpop.xlane.xlu1 %422  ;;  %799 = vmatpush1.bf16.msra.mxu0 %v2349_v22  ;;  %2070 = vmatprep.subr.bf16.mxu1 %v2360_v38 }
 0x19f   : > { %v443_v61 = vmul.f32 0.0078125, %v421_v59  ;;  %v473_v62 = vmul.f32 %v3271_v55, %v3271_v55  ;;  %v444_v63 = vmul.f32 0.0078125, %v423_v60  ;;  %v474_v4 = vmul.f32 %v3274_v56, %v3274_v56  ;;  %800 = vmatprep.subr.bf16.mxu0 %v2350_v29  ;;  %v399_v60 = vld [vmem:[%s330_s27] sm:$0x3f]  ;;  %s1691_s27 = scalar_lea.sflag [#allocation4], %s3165_s16 }
 0x1a0   : > { %2071 = vmatpush3.bf16.msra.mxu1 %v2360_v38  ;;  %v578_v1 = vrot.slane %v399_v60, 1 }
 0x1a1   : > { %v3281_v2 = vsub.f32 %v3214_v10, %v443_v61  ;;  %495 = vadd.xlane.f32.xlu1 %v472_v57  ;;  %497 = vadd.xlane.f32.xlu0 %v473_v62  ;;  %v3284_v3 = vsub.f32 %v3217_v11, %v444_v63  ;;  %v582_v57 = vlaneseq }
 0x1a2   : > { %v425_v5 = vpop.xlane.xlu0 %424  ;;  %v427_v6 = vpop.xlane.xlu1 %426  ;;  %801 = vmatpush1.bf16.msra.mxu0 %v2353_v33  ;;  %2072 = vmatprep.subr.bf16.mxu1 %v2364_v43 }
 0x1a3   : > { %v445_v8 = vmul.f32 0.0078125, %v425_v5  ;;  %v475_v9 = vmul.f32 %v3281_v2, %v3281_v2  ;;  %v446_v16 = vmul.f32 0.0078125, %v427_v6  ;;  %v476_v17 = vmul.f32 %v3284_v3, %v3284_v3 }
 0x1a4   : > { %2073 = vmatpush3.bf16.msra.mxu1 %v2364_v43 }
 0x1a5   : > { %v3291_v10 = vsub.f32 %v3224_v12, %v445_v8  ;;  %499 = vadd.xlane.f32.xlu1 %v474_v4  ;;  %501 = vadd.xlane.f32.xlu0 %v475_v9  ;;  %v3294_v11 = vsub.f32 %v3227_v13, %v446_v16  ;;  %v583_v4 = vshrl.u32 %v582_v57, 7 }
 0x1a6   : > { %v429_v20 = vpop.xlane.xlu0 %428  ;;  %v431_v21 = vpop.xlane.xlu1 %430  ;;  %2074 = vmatprep.subr.bf16.mxu1 %v2366_v45 }
 0x1a7   : > { %v447_v23 = vmul.f32 0.0078125, %v429_v20  ;;  %v477_v26 = vmul.f32 %v3291_v10, %v3291_v10  ;;  %v448_v27 = vmul.f32 0.0078125, %v431_v21  ;;  %v478_v28 = vmul.f32 %v3294_v11, %v3294_v11 }
 0x1a8   : > { %2075 = vmatpush3.bf16.msra.mxu1 %v2366_v45  ;;  %v584_v18 = vsub.s32 0, %v583_v4 }
 0x1a9   : > { %v3301_v12 = vsub.f32 %v3232_v14, %v447_v23  ;;  %503 = vadd.xlane.f32.xlu1 %v476_v17  ;;  %505 = vadd.xlane.f32.xlu0 %v477_v26  ;;  %v3304_v13 = vsub.f32 %v3235_v15, %v448_v27  ;;  %v2354_v15 = vld [vmem:[#allocation7 + $0x7c] ss:$12 sps:$4 sm:$0xff]   ;;  %v580_v17 = vadd.f32 1.0, %v578_v1  ;;  %v3334_v1 = vld [vmem:[#allocation11 + $0x8] sm:$0xff]  }
 0x1aa   : > { %802 = vmatprep.subr.bf16.mxu0 %v2354_v15  ;;  %2092 = vmatprep.subr.bf16.mxu1 %v3313_v49 }
 0x1ab   : > { %v479_v34 = vmul.f32 %v3301_v12, %v3301_v12  ;;  %v480_v14 = vmul.f32 %v3304_v13, %v3304_v13  ;;  %803 = vmatpush1.bf16.msra.mxu0 %v2357_v36  ;;  %v3320_v29 = vrot.slane %v580_v17, %v584_v18 }
 0x1ac   : > { %804 = vmatprep.subr.bf16.mxu0 %v2358_v37 }
 0x1ad   : > { %507 = vadd.xlane.f32.xlu1 %v478_v28  ;;  %509 = vadd.xlane.f32.xlu0 %v479_v34 }
 0x1af   : > { %805 = vmatpush1.bf16.msra.mxu0 %v2361_v41 }
 0x1b0   : > { %806 = vmatprep.subr.bf16.mxu0 %v2362_v42  ;;  %v3324_v42 = vrot.slane %v399_v60, %v584_v18 }
 0x1b1   : > { %511 = vadd.xlane.f32.xlu1 %v480_v14 }
 0x1b3   : > { %807 = vmatpush1.bf16.msra.mxu0 %v2365_v44 }
 0x1b4   : > { %2124 = vmatprep.subr.bf16.mxu0 %v3313_v49 }
 0x21e   : > { %v482_v50 = vpop.xlane.xlu0 %481 }
 0x21f   : > { %v513_v51 = vmul.f32 0.0078125, %v482_v50 }
 0x221   : > { %v529_v52 = vadd.f32 1e-06, %v513_v51 }
 0x222   : > { %v484_v53 = vpop.xlane.xlu1 %483  ;;  %v486_v54 = vpop.xlane.xlu0 %485 }
 0x223   : > { %2375 = vrsqrt.f32 %v529_v52  ;;  %v514_v58 = vmul.f32 0.0078125, %v484_v53  ;;  %v515_v59 = vmul.f32 0.0078125, %v486_v54 }
 0x225   : > { %v530_v61 = vadd.f32 1e-06, %v514_v58  ;;  %v531_v62 = vadd.f32 1e-06, %v515_v59 }
 0x226   : > { %v488_v63 = vpop.xlane.xlu1 %487  ;;  %v490_v0 = vpop.xlane.xlu0 %489 }
 0x227   : > { %2377 = vrsqrt.f32 %v530_v61  ;;  %v516_v5 = vmul.f32 0.0078125, %v488_v63  ;;  %v517_v6 = vmul.f32 0.0078125, %v490_v0 }
 0x228   : > { %2379 = vrsqrt.f32 %v531_v62 }
 0x229   : > { %v532_v7 = vadd.f32 1e-06, %v516_v5  ;;  %v533_v8 = vadd.f32 1e-06, %v517_v6 }
 0x22a   : > { %v492_v9 = vpop.xlane.xlu1 %491  ;;  %v494_v16 = vpop.xlane.xlu0 %493 }
 0x22b   : > { %2381 = vrsqrt.f32 %v532_v7  ;;  %v518_v19 = vmul.f32 0.0078125, %v492_v9  ;;  %v519_v20 = vmul.f32 0.0078125, %v494_v16 }
 0x22c   : > { %2383 = vrsqrt.f32 %v533_v8 }
 0x22d   : > { %v2376_v21 = vpop.eup %2375  ;;  %v534_v22 = vadd.f32 1e-06, %v518_v19  ;;  %v535_v23 = vadd.f32 1e-06, %v519_v20 }
 0x22e   : > { %v496_v26 = vpop.xlane.xlu1 %495  ;;  %v498_v27 = vpop.xlane.xlu0 %497  ;;  %v561_v28 = vmul.f32 %v2376_v21, %v3239_v24 }
 0x22f   : > { %2385 = vrsqrt.f32 %v534_v22  ;;  %v520_v30 = vmul.f32 0.0078125, %v496_v26  ;;  %v521_v33 = vmul.f32 0.0078125, %v498_v27 }
 0x230   : > { %2387 = vrsqrt.f32 %v535_v23  ;;  %v587_v41 = vmul.f32 %v3320_v29, %v561_v28  ;;  %v3345_v23 = vld [vmem:[#allocation11 + $0x10] sm:$0xff]  }
 0x231   : > { %v2378_v34 = vpop.eup %2377  ;;  %v536_v14 = vadd.f32 1e-06, %v520_v30  ;;  %v537_v15 = vadd.f32 1e-06, %v521_v33 }
 0x232   : > { %v2380_v35 = vpop.eup %2379  ;;  %v500_v36 = vpop.xlane.xlu1 %499  ;;  %v562_v38 = vmul.f32 %v2378_v34, %v3245_v31  ;;  %v608_v58 = vadd.f32 %v3324_v42, %v587_v41 }
 0x233   : > { %v502_v37 = vpop.xlane.xlu0 %501  ;;  %2389 = vrsqrt.f32 %v536_v14  ;;  %v522_v24 = vmul.f32 0.0078125, %v500_v36  ;;  %v563_v44 = vmul.f32 %v2380_v35, %v3241_v25 }
 0x234   : > { %v523_v43 = vmul.f32 0.0078125, %v502_v37  ;;  %2391 = vrsqrt.f32 %v537_v15  ;;  %v588_v45 = vmul.f32 %v3320_v29, %v562_v38 }
 0x235   : > { %v2382_v50 = vpop.eup %2381  ;;  %v538_v51 = vadd.f32 1e-06, %v522_v24  ;;  %v589_v53 = vmul.f32 %v3320_v29, %v563_v44  ;;  %v3358_v24 = vld [vmem:[#allocation11 + $0x18] sm:$0xff]  }
 0x236   : > { %v539_v52 = vadd.f32 1e-06, %v523_v43  ;;  %v2384_v54 = vpop.eup %2383  ;;  %v504_v57 = vpop.xlane.xlu1 %503  ;;  %v609_v59 = vadd.f32 %v3324_v42, %v588_v45  ;;  %v564_v60 = vmul.f32 %v2382_v50, %v3247_v32 }
 0x237   : > { %v506_v31 = vpop.xlane.xlu0 %505  ;;  %2393 = vrsqrt.f32 %v538_v51  ;;  %v524_v61 = vmul.f32 0.0078125, %v504_v57  ;;  %v565_v0 = vmul.f32 %v2384_v54, %v3253_v39  ;;  %v610_v7 = vadd.f32 %v3324_v42, %v589_v53 }
 0x238   : > { %v525_v25 = vmul.f32 0.0078125, %v506_v31  ;;  %2395 = vrsqrt.f32 %v539_v52  ;;  %v624_v62 = vpack.c.bf16 %v609_v59, %v608_v58  ;;  %v590_v63 = vmul.f32 %v3320_v29, %v564_v60 }
 0x239   : > { %v2386_v4 = vpop.eup %2385  ;;  %v540_v5 = vadd.f32 1e-06, %v524_v61  ;;  %v591_v18 = vmul.f32 %v3320_v29, %v565_v0 }
 0x23a   : > { %v541_v6 = vadd.f32 1e-06, %v525_v25  ;;  %v2388_v8 = vpop.eup %2387  ;;  %v508_v9 = vpop.xlane.xlu1 %507  ;;  %825 = vmatmul.mubr.bf16.vlgmr.msra.gmra.mrb[0].mxu0 %v624_v62  ;;  %2076 = vmatprep.mubr.bf16.mxu1 %v624_v62  ;;  %v611_v16 = vadd.f32 %v3324_v42, %v590_v63  ;;  %v566_v17 = vmul.f32 %v2386_v4, %v3255_v40 }
 0x23b   : > { %v510_v32 = vpop.xlane.xlu0 %509  ;;  %2397 = vrsqrt.f32 %v540_v5  ;;  %v526_v39 = vmul.f32 0.0078125, %v508_v9  ;;  %834 = vmatprep.mubr.bf16.mxu0 %v2795_v46  ;;  %v567_v20 = vmul.f32 %v2388_v8, %v3261_v47  ;;  %2125 = vmatpush3.bf16.msra.mxu0 %v3313_v49  ;;  %v612_v47 = vadd.f32 %v3324_v42, %v591_v18 }
 0x23c   : > { %v527_v19 = vmul.f32 0.0078125, %v510_v32  ;;  %2399 = vrsqrt.f32 %v541_v6  ;;  %v625_v21 = vpack.c.bf16 %v611_v16, %v610_v7  ;;  %v592_v22 = vmul.f32 %v3320_v29, %v566_v17  ;;  %2126 = vmatprep.subr.bf16.mxu0 %v3334_v1 }
 0x23d   : > { %v2390_v40 = vpop.eup %2389  ;;  %v542_v26 = vadd.f32 1e-06, %v526_v39  ;;  %v593_v28 = vmul.f32 %v3320_v29, %v567_v20 }
 0x23e   : > { %v543_v27 = vadd.f32 1e-06, %v527_v19  ;;  %v2392_v30 = vpop.eup %2391  ;;  %v512_v33 = vpop.xlane.xlu1 %511  ;;  %2077 = vmatmul.mubr.bf16.vlgmr.msra.gmra.mrb[0].mxu1 %v625_v21  ;;  %v613_v34 = vadd.f32 %v3324_v42, %v592_v22  ;;  %v568_v14 = vmul.f32 %v2390_v40, %v3264_v48 }
 0x23f   : > { %2401 = vrsqrt.f32 %v542_v26  ;;  %v528_v15 = vmul.f32 0.0078125, %v512_v33  ;;  %v569_v35 = vmul.f32 %v2392_v30, %v3271_v55  ;;  %2093 = vmatpush3.bf16.msra.mxu1 %v3313_v49  ;;  %2127 = vmatpush3.bf16.msra.mxu0 %v3334_v1  ;;  %v614_v48 = vadd.f32 %v3324_v42, %v593_v28 }
 0x240   : > { %2403 = vrsqrt.f32 %v543_v27  ;;  %v626_v36 = vpack.c.bf16 %v613_v34, %v612_v47  ;;  %v594_v37 = vmul.f32 %v3320_v29, %v568_v14  ;;  %2094 = vmatprep.subr.bf16.mxu1 %v3334_v1  ;;  %2128 = vmatprep.subr.bf16.mxu0 %v3345_v23 }
 0x241   : > { %v2394_v38 = vpop.eup %2393  ;;  %v544_v41 = vadd.f32 1e-06, %v528_v15  ;;  %v595_v45 = vmul.f32 %v3320_v29, %v569_v35 }
 0x242   : > { %v2396_v43 = vpop.eup %2395  ;;  %835 = vmatmul.mubr.bf16.gmra.mrb[4].mxu0 %v625_v21  ;;  %2080 = vmatprep.mubr.bf16.mxu1 %v626_v36  ;;  %v615_v55 = vadd.f32 %v3324_v42, %v594_v37  ;;  %v570_v44 = vmul.f32 %v2394_v38, %v3274_v56  ;;  %v3371_v56 = vld [vmem:[#allocation11 + $0x20] sm:$0xff]  }
 0x243   : > { %2405 = vrsqrt.f32 %v544_v41  ;;  %844 = vmatprep.mubr.bf16.mxu0 %v2795_v46  ;;  %v571_v50 = vmul.f32 %v2396_v43, %v3281_v2  ;;  %2095 = vmatpush3.bf16.msra.mxu1 %v3334_v1  ;;  %v616_v2 = vadd.f32 %v3324_v42, %v595_v45 }
 0x244   : > { %v627_v51 = vpack.c.bf16 %v615_v55, %v614_v48  ;;  %v596_v52 = vmul.f32 %v3320_v29, %v570_v44  ;;  %2096 = vmatprep.subr.bf16.mxu1 %v3345_v23  ;;  %2129 = vmatpush3.bf16.msra.mxu0 %v3345_v23 }
 0x245   : > { %v2398_v53 = vpop.eup %2397  ;;  %v597_v54 = vmul.f32 %v3320_v29, %v571_v50  ;;  %2130 = vmatprep.subr.bf16.mxu0 %v3358_v24 }
 0x246   : > { %v2400_v57 = vpop.eup %2399  ;;  %2081 = vmatmul.mubr.bf16.gmra.mrb[4].mxu1 %v627_v51  ;;  %v617_v31 = vadd.f32 %v3324_v42, %v596_v52  ;;  %v572_v58 = vmul.f32 %v2398_v53, %v3284_v3 }
 0x247   : > { %v573_v59 = vmul.f32 %v2400_v57, %v3291_v10  ;;  %2097 = vmatpush3.bf16.msra.mxu1 %v3345_v23  ;;  %v618_v62 = vadd.f32 %v3324_v42, %v597_v54 }
 0x248   : > { %v628_v60 = vpack.c.bf16 %v617_v31, %v616_v2  ;;  %v598_v61 = vmul.f32 %v3320_v29, %v572_v58  ;;  %2098 = vmatprep.subr.bf16.mxu1 %v3358_v24  ;;  %2131 = vmatpush3.bf16.msra.mxu0 %v3358_v24 }
 0x249   : > { %v2402_v25 = vpop.eup %2401  ;;  %2132 = vmatprep.subr.bf16.mxu0 %v3371_v56  ;;  %v599_v0 = vmul.f32 %v3320_v29, %v573_v59 }
 0x24a   : > { %v2404_v63 = vpop.eup %2403  ;;  %845 = vmatmul.mubr.bf16.gmra.mrb[8].mxu0 %v626_v36  ;;  %2084 = vmatprep.mubr.bf16.mxu1 %v628_v60  ;;  %v619_v3 = vadd.f32 %v3324_v42, %v598_v61  ;;  %v574_v10 = vmul.f32 %v2402_v25, %v3294_v11 }
 0x24b   : > { %854 = vmatprep.mubr.bf16.mxu0 %v2795_v46  ;;  %v575_v4 = vmul.f32 %v2404_v63, %v3301_v12  ;;  %2099 = vmatpush3.bf16.msra.mxu1 %v3358_v24  ;;  %v620_v8 = vadd.f32 %v3324_v42, %v599_v0 }
 0x24c   : > { %v629_v5 = vpack.c.bf16 %v619_v3, %v618_v62  ;;  %v600_v6 = vmul.f32 %v3320_v29, %v574_v10  ;;  %2100 = vmatprep.subr.bf16.mxu1 %v3371_v56  ;;  %2133 = vmatpush3.bf16.msra.mxu0 %v3371_v56 }
 0x24d   : > { %v2406_v7 = vpop.eup %2405  ;;  %v601_v32 = vmul.f32 %v3320_v29, %v575_v4 }
 0x24e   : > { %2085 = vmatmul.mubr.bf16.gmra.mrb[8].mxu1 %v629_v5  ;;  %v621_v11 = vadd.f32 %v3324_v42, %v600_v6  ;;  %v576_v9 = vmul.f32 %v2406_v7, %v3304_v13  ;;  %v3404_v13 = vld [vmem:[#allocation11 + $0x28] sm:$0xff]  }
 0x24f   : > { %2101 = vmatpush3.bf16.msra.mxu1 %v3371_v56  ;;  %v622_v17 = vadd.f32 %v3324_v42, %v601_v32  ;;  %2134 = vmatprep.subr.bf16.mxu0 %v3404_v13 }
 0x250   : > { %v630_v12 = vpack.c.bf16 %v621_v11, %v620_v8  ;;  %v602_v16 = vmul.f32 %v3320_v29, %v576_v9  ;;  %2102 = vmatprep.subr.bf16.mxu1 %v3404_v13  ;;  %2135 = vmatpush3.bf16.msra.mxu0 %v3404_v13  ;;  %v3410_v29 = vld [vmem:[#allocation11 + $0x30] sm:$0xff]  }
 0x251   : > { %2136 = vmatprep.subr.bf16.mxu0 %v3410_v29 }
 0x252   : > { %855 = vmatmul.mubr.bf16.gmra.mrb[12].mxu0 %v627_v51  ;;  %2088 = vmatprep.mubr.bf16.mxu1 %v630_v12  ;;  %v623_v18 = vadd.f32 %v3324_v42, %v602_v16 }
 0x253   : > { %864 = vmatprep.mubr.bf16.mxu0 %v2795_v46  ;;  %2103 = vmatpush3.bf16.msra.mxu1 %v3404_v13 }
 0x254   : > { %v631_v39 = vpack.c.bf16 %v623_v18, %v622_v17  ;;  %2104 = vmatprep.subr.bf16.mxu1 %v3410_v29  ;;  %2137 = vmatpush3.bf16.msra.mxu0 %v3410_v29 }
 0x256   : > { %2089 = vmatmul.mubr.bf16.gmra.mrb[12].mxu1 %v631_v39 }
 0x257   : > { %2105 = vmatpush3.bf16.msra.mxu1 %v3410_v29 }
 0x25a   : > { %865 = vmatmul.mubr.bf16.gmra.mrb[16].mxu0 %v628_v60 }
 0x25b   : > { %874 = vmatprep.mubr.bf16.mxu0 %v2795_v46 }
 0x262   : > { %875 = vmatmul.mubr.bf16.gmra.mrb[20].mxu0 %v629_v5 }
 0x263   : > { %884 = vmatprep.mubr.bf16.mxu0 %v2795_v46 }
 0x26a   : > { %885 = vmatmul.mubr.bf16.gmra.mrb[24].mxu0 %v630_v12 }
 0x26b   : > { %894 = vmatprep.mubr.bf16.mxu0 %v2795_v46  ;;  %v3416_v46 = vld [vmem:[#allocation11 + $0x38] sm:$0xff]  }
 0x26c   : > { %2106 = vmatprep.subr.bf16.mxu1 %v3416_v46  ;;  %2138 = vmatprep.subr.bf16.mxu0 %v3416_v46 }
 0x26d   : > { %2107 = vmatpush3.bf16.msra.mxu1 %v3416_v46  ;;  %2139 = vmatpush3.bf16.msra.mxu0 %v3416_v46 }
 0x26e   : > { %2156 = vmatprep.subr.bf16.mxu1 %v3313_v49 }
 0x272   : > { %895 = vmatmul.mubr.bf16.gmra.mrb[28].mxu0 %v631_v39 }
 0x30d   : > { %v3423_v42 = vpop.f32.mrb[0].mxu0 }
 0x30e   : > { %v3426_v19 = vpop.f32.mrb[1].mxu0  ;;  %v1002_v21 = vmul.f32 %v3423_v42, %v3423_v42 }
 0x30f   : > { %v3428_v20 = vpop.f32.mrb[2].mxu0  ;;  %v1026_v26 = vmul.f32 %v3426_v19, %v3426_v19 }
 0x310   : > { %v1003_v22 = vmul.f32 %v3428_v20, %v3428_v20  ;;  %v3434_v40 = vpop.f32.mrb[3].mxu0 }
 0x311   : > { %v1027_v27 = vmul.f32 %v3434_v40, %v3434_v40  ;;  %v2078_v28 = vpop.f32.mrb[0].mxu1 }
 0x312   : > { %v1018_v30 = vpack.c.bf16 %v1003_v22, %v1002_v21  ;;  %v1998_v33 = vpack.c.bf16 %v2078_v28, %v2078_v28  ;;  %v939_v47 = vpop.f32.mrb[1].mxu1 }
 0x313   : > { %v1042_v34 = vpack.c.bf16 %v1027_v27, %v1026_v26  ;;  %v1996_v14 = vpack.c.bf16 %v939_v47, %v939_v47  ;;  %v2079_v15 = vpop.f32.mrb[2].mxu1 }
 0x314   : > { %1676 = vst [vmem:[%s3440_s20 + $0x20] sm:$0xf] %v1998_v33  ;;  %v1999_v35 = vpack.c.bf16 %v2079_v15, %v2079_v15  ;;  %v942_v36 = vpop.f32.mrb[3].mxu1  ;;  %2108 = vmatprep.mubr.bf16.mxu1 %v1018_v30 }
 0x315   : > { %1674 = vst [vmem:[%s3440_s20 + $0x8] sm:$0xf] %v1996_v14  ;;  %v1997_v37 = vpack.c.bf16 %v942_v36, %v942_v36  ;;  %v3444_v38 = vpop.f32.mrb[4].mxu0  ;;  %2140 = vmatprep.mubr.bf16.mxu0 %v1042_v34 }
 0x316   : > { %1677 = vst [vmem:[%s3440_s20 + $0x2c] sm:$0xf] %v1999_v35  ;;  %v3447_v41 = vpop.f32.mrb[5].mxu0  ;;  %v1004_v43 = vmul.f32 %v3444_v38, %v3444_v38 }
 0x317   : > { %1675 = vst [vmem:[%s3440_s20 + $0x14] sm:$0xf] %v1997_v37  ;;  %v3450_v48 = vpop.f32.mrb[6].mxu0  ;;  %v1028_v45 = vmul.f32 %v3447_v41, %v3447_v41 }
 0x318   : > { %v1005_v55 = vmul.f32 %v3450_v48, %v3450_v48  ;;  %v3456_v44 = vpop.f32.mrb[7].mxu0 }
 0x319   : > { %v1029_v50 = vmul.f32 %v3456_v44, %v3456_v44  ;;  %v2082_v51 = vpop.f32.mrb[4].mxu1 }
 0x31a   : > { %v1019_v52 = vpack.c.bf16 %v1005_v55, %v1004_v43  ;;  %v2002_v53 = vpack.c.bf16 %v2082_v51, %v2082_v51  ;;  %v955_v54 = vpop.f32.mrb[5].mxu1 }
 0x31b   : > { %v1043_v57 = vpack.c.bf16 %v1029_v50, %v1028_v45  ;;  %v2000_v2 = vpack.c.bf16 %v955_v54, %v955_v54  ;;  %v2083_v31 = vpop.f32.mrb[6].mxu1 }
 0x31c   : > { %1680 = vst [vmem:[%s3440_s20 + $0x50] sm:$0xf] %v2002_v53  ;;  %v2003_v58 = vpack.c.bf16 %v2083_v31, %v2083_v31  ;;  %v958_v59 = vpop.f32.mrb[7].mxu1  ;;  %2109 = vmatmul.mubr.bf16.vlgmr.msra.gmra.mrb[16].mxu1 %v1019_v52 }
 0x31d   : > { %1678 = vst [vmem:[%s3440_s20 + $0x38] sm:$0xf] %v2000_v2  ;;  %v2001_v60 = vpack.c.bf16 %v958_v59, %v958_v59  ;;  %v3464_v61 = vpop.f32.mrb[8].mxu0  ;;  %2141 = vmatmul.mubr.bf16.vlgmr.msra.gmra.mrb[32].mxu0 %v1043_v57  ;;  %2164 = vmatpush3.bf16.msra.mxu1 %v3313_v49 }
 0x31e   : > { %1681 = vst [vmem:[%s3440_s20 + $0x5c] sm:$0xf] %v2003_v58  ;;  %v3468_v25 = vpop.f32.mrb[9].mxu0  ;;  %2157 = vmatprep.subr.bf16.mxu1 %v3334_v1  ;;  %v1006_v63 = vmul.f32 %v3464_v61, %v3464_v61 }
 0x31f   : > { %1679 = vst [vmem:[%s3440_s20 + $0x44] sm:$0xf] %v2001_v60  ;;  %v3472_v62 = vpop.f32.mrb[10].mxu0  ;;  %v1030_v49 = vmul.f32 %v3468_v25, %v3468_v25 }
 0x320   : > { %v1007_v3 = vmul.f32 %v3472_v62, %v3472_v62  ;;  %v3478_v10 = vpop.f32.mrb[11].mxu0 }
 0x321   : > { %v1031_v0 = vmul.f32 %v3478_v10, %v3478_v10  ;;  %v2086_v4 = vpop.f32.mrb[8].mxu1  ;;  %2165 = vmatpush3.bf16.msra.mxu1 %v3334_v1 }
 0x322   : > { %v1020_v5 = vpack.c.bf16 %v1007_v3, %v1006_v63  ;;  %v2006_v6 = vpack.c.bf16 %v2086_v4, %v2086_v4  ;;  %v971_v7 = vpop.f32.mrb[9].mxu1  ;;  %2158 = vmatprep.subr.bf16.mxu1 %v3345_v23 }
 0x323   : > { %v1044_v8 = vpack.c.bf16 %v1031_v0, %v1030_v49  ;;  %v2004_v11 = vpack.c.bf16 %v971_v7, %v971_v7  ;;  %v2087_v9 = vpop.f32.mrb[10].mxu1 }
 0x324   : > { %1684 = vst [vmem:[%s3440_s20 + $0x80] sm:$0xf] %v2006_v6  ;;  %v2007_v32 = vpack.c.bf16 %v2087_v9, %v2087_v9  ;;  %v974_v12 = vpop.f32.mrb[11].mxu1  ;;  %2112 = vmatprep.mubr.bf16.mxu1 %v1020_v5 }
 0x325   : > { %1682 = vst [vmem:[%s3440_s20 + $0x68] sm:$0xf] %v2004_v11  ;;  %v2005_v16 = vpack.c.bf16 %v974_v12, %v974_v12  ;;  %v3488_v17 = vpop.f32.mrb[12].mxu0  ;;  %2144 = vmatprep.mubr.bf16.mxu0 %v1044_v8  ;;  %2166 = vmatpush3.bf16.msra.mxu1 %v3345_v23 }
 0x326   : > { %1685 = vst [vmem:[%s3440_s20 + $0x8c] sm:$0xf] %v2007_v32  ;;  %v3492_v1 = vpop.f32.mrb[13].mxu0  ;;  %2159 = vmatprep.subr.bf16.mxu1 %v3358_v24  ;;  %v1008_v39 = vmul.f32 %v3488_v17, %v3488_v17 }
 0x327   : > { %1683 = vst [vmem:[%s3440_s20 + $0x74] sm:$0xf] %v2005_v16  ;;  %v3496_v18 = vpop.f32.mrb[14].mxu0  ;;  %v1032_v23 = vmul.f32 %v3492_v1, %v3492_v1 }
 0x328   : > { %v1009_v21 = vmul.f32 %v3496_v18, %v3496_v18  ;;  %v3502_v22 = vpop.f32.mrb[15].mxu0 }
 0x329   : > { %v1033_v26 = vmul.f32 %v3502_v22, %v3502_v22  ;;  %v2090_v27 = vpop.f32.mrb[12].mxu1  ;;  %2167 = vmatpush3.bf16.msra.mxu1 %v3358_v24 }
 0x32a   : > { %v1021_v28 = vpack.c.bf16 %v1009_v21, %v1008_v39  ;;  %v2010_v30 = vpack.c.bf16 %v2090_v27, %v2090_v27  ;;  %v987_v33 = vpop.f32.mrb[13].mxu1  ;;  %2160 = vmatprep.subr.bf16.mxu1 %v3371_v56 }
 0x32b   : > { %v1045_v47 = vpack.c.bf16 %v1033_v26, %v1032_v23  ;;  %v2008_v34 = vpack.c.bf16 %v987_v33, %v987_v33  ;;  %v2091_v14 = vpop.f32.mrb[14].mxu1 }
 0x32c   : > { %1688 = vst [vmem:[%s3440_s20 + $0xb0] sm:$0xf] %v2010_v30  ;;  %v2011_v15 = vpack.c.bf16 %v2091_v14, %v2091_v14  ;;  %v990_v35 = vpop.f32.mrb[15].mxu1  ;;  %2113 = vmatmul.mubr.bf16.gmra.mrb[20].mxu1 %v1021_v28 }
 0x32d   : > { %1686 = vst [vmem:[%s3440_s20 + $0x98] sm:$0xf] %v2008_v34  ;;  %v2009_v36 = vpack.c.bf16 %v990_v35, %v990_v35  ;;  %v3512_v37 = vpop.f32.mrb[16].mxu0  ;;  %2145 = vmatmul.mubr.bf16.gmra.mrb[36].mxu0 %v1045_v47  ;;  %2168 = vmatpush3.bf16.msra.mxu1 %v3371_v56 }
 0x32e   : > { %1689 = vst [vmem:[%s3440_s20 + $0xbc] sm:$0xf] %v2011_v15  ;;  %v3516_v24 = vpop.f32.mrb[17].mxu0  ;;  %2161 = vmatprep.subr.bf16.mxu1 %v3404_v13  ;;  %v1010_v55 = vmul.f32 %v3512_v37, %v3512_v37 }
 0x32f   : > { %1687 = vst [vmem:[%s3440_s20 + $0xa4] sm:$0xf] %v2009_v36  ;;  %v3520_v43 = vpop.f32.mrb[18].mxu0  ;;  %v1034_v51 = vmul.f32 %v3516_v24, %v3516_v24 }
 0x330   : > { %v1011_v45 = vmul.f32 %v3520_v43, %v3520_v43  ;;  %v3526_v50 = vpop.f32.mrb[19].mxu0 }
 0x331   : > { %v1035_v56 = vmul.f32 %v3526_v50, %v3526_v50  ;;  %2169 = vmatpush3.bf16.msra.mxu1 %v3404_v13 }
 0x332   : > { %v1022_v52 = vpack.c.bf16 %v1011_v45, %v1010_v55  ;;  %2162 = vmatprep.subr.bf16.mxu1 %v3410_v29 }
 0x333   : > { %v1046_v53 = vpack.c.bf16 %v1035_v56, %v1034_v51 }
 0x334   : > { %2116 = vmatprep.mubr.bf16.mxu1 %v1022_v52 }
 0x335   : > { %v3534_v54 = vpop.f32.mrb[20].mxu0  ;;  %2170 = vmatpush3.bf16.msra.mxu1 %v3410_v29 }
 0x336   : > { %v3537_v57 = vpop.f32.mrb[21].mxu0  ;;  %2163 = vmatprep.subr.bf16.mxu1 %v3416_v46  ;;  %v1012_v31 = vmul.f32 %v3534_v54, %v3534_v54 }
 0x337   : > { %v3540_v2 = vpop.f32.mrb[22].mxu0  ;;  %v1036_v59 = vmul.f32 %v3537_v57, %v3537_v57 }
 0x338   : > { %v1013_v13 = vmul.f32 %v3540_v2, %v3540_v2  ;;  %v3546_v58 = vpop.f32.mrb[23].mxu0 }
 0x339   : > { %v1037_v29 = vmul.f32 %v3546_v58, %v3546_v58  ;;  %2171 = vmatpush3.bf16.msra.mxu1 %v3416_v46 }
 0x33a   : > { %v1023_v60 = vpack.c.bf16 %v1013_v13, %v1012_v31 }
 0x33b   : > { %v1047_v63 = vpack.c.bf16 %v1037_v29, %v1036_v59  ;;  %v3585_v29 = vld [vmem:[#allocation8] ss:$0 sm:$0xff] }
 0x33c   : > { %2117 = vmatmul.mubr.bf16.gmra.mrb[24].mxu1 %v1023_v60 }
 0x33d   : > { %v3553_v3 = vpop.f32.mrb[24].mxu0 }
 0x33e   : > { %v3555_v49 = vpop.f32.mrb[25].mxu0  ;;  %v1014_v4 = vmul.f32 %v3553_v3, %v3553_v3 }
 0x33f   : > { %v3557_v0 = vpop.f32.mrb[26].mxu0  ;;  %v1038_v46 = vmul.f32 %v3555_v49, %v3555_v49 }
 0x340   : > { %v1015_v5 = vmul.f32 %v3557_v0, %v3557_v0  ;;  %v3563_v6 = vpop.f32.mrb[27].mxu0 }
 0x341   : > { %v1039_v7 = vmul.f32 %v3563_v6, %v3563_v6 }
 0x342   : > { %v1024_v8 = vpack.c.bf16 %v1015_v5, %v1014_v4 }
 0x343   : > { %v1048_v11 = vpack.c.bf16 %v1039_v7, %v1038_v46  ;;  %v3589_v46 = vld [vmem:[#allocation10] ss:$0 sm:$0xff] }
 0x344   : > { %2120 = vmatprep.mubr.bf16.mxu1 %v1024_v8 }
 0x345   : > { %v3569_v9 = vpop.f32.mrb[28].mxu0 }
 0x346   : > { %v3571_v32 = vpop.f32.mrb[29].mxu0  ;;  %v1016_v16 = vmul.f32 %v3569_v9, %v3569_v9 }
 0x347   : > { %v3573_v12 = vpop.f32.mrb[30].mxu0  ;;  %v1040_v23 = vmul.f32 %v3571_v32, %v3571_v32 }
 0x348   : > { %v1017_v39 = vmul.f32 %v3573_v12, %v3573_v12  ;;  %v3579_v21 = vpop.f32.mrb[31].mxu0 }
 0x349   : > { %v1041_v26 = vmul.f32 %v3579_v21, %v3579_v21 }
 0x34a   : > { %v1025_v27 = vpack.c.bf16 %v1017_v39, %v1016_v16 }
 0x34b   : > { %v1049_v28 = vpack.c.bf16 %v1041_v26, %v1040_v23 }
 0x34c   : > { %2121 = vmatmul.mubr.bf16.gmra.mrb[28].mxu1 %v1025_v27 }
 0x34d   : > { %2148 = vmatprep.mubr.bf16.mxu1 %v1046_v53 }
 0x354   : > { %2149 = vmatmul.mubr.bf16.vlgmr.msra.gmra.mrb[32].mxu1 %v1047_v63 }
 0x355   : > { %2152 = vmatprep.mubr.bf16.mxu1 %v1048_v11 }
 0x35c   : > { %2153 = vmatmul.mubr.bf16.gmra.mrb[36].mxu1 %v1049_v28 }
 0x3ef   : > { %v2110_v30 = vpop.f32.mrb[16].mxu1 }
 0x3f0   : > { %v1310_v33 = vmax.f32 %v2110_v30, 1e-24  ;;  %v1148_v47 = vpop.f32.mrb[17].mxu1  ;;  %v2142_v34 = vpop.f32.mrb[32].mxu0 }
 0x3f1   : > { %v1308_v14 = vmax.f32 %v1148_v47, 1e-24  ;;  %v1381_v15 = vmax.f32 %v2142_v34, 1e-24  ;;  %v2111_v35 = vpop.f32.mrb[18].mxu1  ;;  %v1245_v36 = vpop.f32.mrb[33].mxu0 }
 0x3f2   : > { %2407 = vrsqrt.f32 %v1310_v33  ;;  %v1311_v55 = vmax.f32 %v2111_v35, 1e-24  ;;  %v1379_v45 = vmax.f32 %v1245_v36, 1e-24  ;;  %v1151_v51 = vpop.f32.mrb[19].mxu1  ;;  %v2143_v56 = vpop.f32.mrb[34].mxu0 }
 0x3f3   : > { %2409 = vrsqrt.f32 %v1308_v14  ;;  %v1309_v52 = vmax.f32 %v1151_v51, 1e-24  ;;  %v1248_v31 = vpop.f32.mrb[35].mxu0  ;;  %v1382_v53 = vmax.f32 %v2143_v56, 1e-24 }
 0x3f4   : > { %2411 = vrsqrt.f32 %v1381_v15  ;;  %v1380_v13 = vmax.f32 %v1248_v31, 1e-24 }
 0x3f5   : > { %2413 = vrsqrt.f32 %v1311_v55 }
 0x3f6   : > { %2415 = vrsqrt.f32 %v1379_v45 }
 0x3f7   : > { %2417 = vrsqrt.f32 %v1309_v52 }
 0x3f8   : > { %2419 = vrsqrt.f32 %v1382_v53 }
 0x3f9   : > { %2421 = vrsqrt.f32 %v1380_v13 }
 0x3fc   : > { %v2408_v59 = vpop.eup %2407 }
 0x3fd   : > { %v2410_v60 = vpop.eup %2409  ;;  %v1342_v63 = vmul.f32 %v2408_v59, %v3444_v38 }
 0x3fe   : > { %v2412_v4 = vpop.eup %2411  ;;  %v1340_v5 = vmul.f32 %v2410_v60, %v3423_v42 }
 0x3ff   : > { %v2414_v7 = vpop.eup %2413  ;;  %v1365_v8 = vmul.f32 %v3585_v29, %v1342_v63  ;;  %v1413_v11 = vmul.f32 %v2412_v4, %v3447_v41  ;;  %v2114_v16 = vpop.f32.mrb[20].mxu1 }
 0x400   : > { %v2416_v39 = vpop.eup %2415  ;;  %v1363_v23 = vmul.f32 %v3585_v29, %v1340_v5  ;;  %v1343_v26 = vmul.f32 %v2414_v7, %v3450_v48  ;;  %v1314_v27 = vmax.f32 %v2114_v16, 1e-24  ;;  %v1164_v28 = vpop.f32.mrb[21].mxu1 }
 0x401   : > { %v2146_v30 = vpop.f32.mrb[36].mxu0  ;;  %v2418_v38 = vpop.eup %2417  ;;  %v1966_v33 = vpack.c.bf16 %v1365_v8, %v1365_v8  ;;  %v1436_v42 = vmul.f32 %v3589_v46, %v1413_v11  ;;  %v1411_v47 = vmul.f32 %v2416_v39, %v3426_v19  ;;  %v1312_v34 = vmax.f32 %v1164_v28, 1e-24 }
 0x402   : > { %v2115_v14 = vpop.f32.mrb[22].mxu1  ;;  %v1261_v41 = vpop.f32.mrb[37].mxu0  ;;  %v1964_v35 = vpack.c.bf16 %v1363_v23, %v1363_v23  ;;  %v1366_v36 = vmul.f32 %v3585_v29, %v1343_v26  ;;  %v1341_v48 = vmul.f32 %v2418_v38, %v3428_v20  ;;  %2423 = vrsqrt.f32 %v1314_v27 }
 0x403   : > { %v2420_v15 = vpop.eup %2419  ;;  %v1167_v55 = vpop.f32.mrb[23].mxu1  ;;  %1516 = vst [vmem:[%s3440_s20 + $0x18] sm:$0xf] %v1966_v33  ;;  %v1982_v56 = vpack.c.bf16 %v1436_v42, %v1436_v42  ;;  %v1434_v19 = vmul.f32 %v3589_v46, %v1411_v47  ;;  %2425 = vrsqrt.f32 %v1312_v34  ;;  %v1385_v59 = vmax.f32 %v2146_v30, 1e-24 }
 0x404   : > { %v2147_v45 = vpop.f32.mrb[38].mxu0  ;;  %v2422_v51 = vpop.eup %2421  ;;  %v1414_v52 = vmul.f32 %v2420_v15, %v3456_v44  ;;  %1514 = vst [vmem:[%s3440_s20] sm:$0xf] %v1964_v35  ;;  %v1967_v53 = vpack.c.bf16 %v1366_v36, %v1366_v36  ;;  %v1364_v13 = vmul.f32 %v3585_v29, %v1341_v48  ;;  %v1315_v4 = vmax.f32 %v2115_v14, 1e-24 }
 0x405   : > { %v1264_v31 = vpop.f32.mrb[39].mxu0  ;;  %v1412_v20 = vmul.f32 %v2422_v51, %v3434_v40  ;;  %1596 = vst [vmem:[%s3440_s20 + $0x1c] sm:$0xf] %v1982_v56  ;;  %v1980_v60 = vpack.c.bf16 %v1434_v19, %v1434_v19  ;;  %v1383_v5 = vmax.f32 %v1261_v41, 1e-24  ;;  %2427 = vrsqrt.f32 %v1385_v59 }
 0x406   : > { %v1437_v63 = vmul.f32 %v3589_v46, %v1414_v52  ;;  %1517 = vst [vmem:[%s3440_s20 + $0x24] sm:$0xf] %v1967_v53  ;;  %v1965_v44 = vpack.c.bf16 %v1364_v13, %v1364_v13  ;;  %v1313_v8 = vmax.f32 %v1167_v55, 1e-24  ;;  %2429 = vrsqrt.f32 %v1315_v4 }
 0x407   : > { %v1435_v7 = vmul.f32 %v3589_v46, %v1412_v20  ;;  %1594 = vst [vmem:[%s3440_s20 + $0x4] sm:$0xf] %v1980_v60  ;;  %v1386_v40 = vmax.f32 %v2147_v45, 1e-24  ;;  %v1384_v16 = vmax.f32 %v1264_v31, 1e-24  ;;  %2431 = vrsqrt.f32 %v1383_v5 }
 0x408   : > { %v1983_v11 = vpack.c.bf16 %v1437_v63, %v1437_v63  ;;  %1515 = vst [vmem:[%s3440_s20 + $0xc] sm:$0xf] %v1965_v44  ;;  %2433 = vrsqrt.f32 %v1313_v8 }
 0x409   : > { %v1981_v39 = vpack.c.bf16 %v1435_v7, %v1435_v7  ;;  %2435 = vrsqrt.f32 %v1386_v40 }
 0x40a   : > { %1597 = vst [vmem:[%s3440_s20 + $0x28] sm:$0xf] %v1983_v11  ;;  %2437 = vrsqrt.f32 %v1384_v16 }
 0x40b   : > { %1595 = vst [vmem:[%s3440_s20 + $0x10] sm:$0xf] %v1981_v39 }
 0x40c   : > { %v2424_v23 = vpop.eup %2423 }
 0x40d   : > { %v2426_v26 = vpop.eup %2425  ;;  %v1346_v27 = vmul.f32 %v2424_v23, %v3488_v17 }
 0x40e   : > { %v1344_v28 = vmul.f32 %v2426_v26, %v3464_v61 }
 0x40f   : > { %v1369_v30 = vmul.f32 %v3585_v29, %v1346_v27  ;;  %v2118_v38 = vpop.f32.mrb[24].mxu1  ;;  %v2428_v33 = vpop.eup %2427 }
 0x410   : > { %v1367_v42 = vmul.f32 %v3585_v29, %v1344_v28  ;;  %v1318_v47 = vmax.f32 %v2118_v38, 1e-24  ;;  %v1180_v34 = vpop.f32.mrb[25].mxu1  ;;  %v2430_v14 = vpop.eup %2429  ;;  %v1417_v15 = vmul.f32 %v2428_v33, %v3492_v1 }
 0x411   : > { %v1970_v41 = vpack.c.bf16 %v1369_v30, %v1369_v30  ;;  %v1316_v35 = vmax.f32 %v1180_v34, 1e-24  ;;  %v2119_v36 = vpop.f32.mrb[26].mxu1  ;;  %v2432_v48 = vpop.eup %2431  ;;  %v1347_v61 = vmul.f32 %v2430_v14, %v3496_v18 }
 0x412   : > { %v1968_v17 = vpack.c.bf16 %v1367_v42, %v1367_v42  ;;  %2439 = vrsqrt.f32 %v1318_v47  ;;  %v1319_v55 = vmax.f32 %v2119_v36, 1e-24  ;;  %v1183_v45 = vpop.f32.mrb[27].mxu1  ;;  %v2434_v51 = vpop.eup %2433  ;;  %v1440_v56 = vmul.f32 %v3589_v46, %v1417_v15 }
 0x413   : > { %1520 = vst [vmem:[%s3440_s20 + $0x48] sm:$0xf] %v1970_v41  ;;  %v1415_v19 = vmul.f32 %v2432_v48, %v3468_v25  ;;  %2441 = vrsqrt.f32 %v1316_v35  ;;  %v1317_v52 = vmax.f32 %v1183_v45, 1e-24  ;;  %v2436_v1 = vpop.eup %2435  ;;  %v1370_v31 = vmul.f32 %v3585_v29, %v1347_v61 }
 0x414   : > { %1518 = vst [vmem:[%s3440_s20 + $0x30] sm:$0xf] %v1968_v17  ;;  %v1345_v53 = vmul.f32 %v2434_v51, %v3472_v62  ;;  %2443 = vrsqrt.f32 %v1319_v55  ;;  %v2438_v18 = vpop.eup %2437  ;;  %v1986_v13 = vpack.c.bf16 %v1440_v56, %v1440_v56  ;;  %v1418_v25 = vmul.f32 %v2436_v1, %v3502_v22 }
 0x415   : > { %v1438_v20 = vmul.f32 %v3589_v46, %v1415_v19  ;;  %2445 = vrsqrt.f32 %v1317_v52  ;;  %v1971_v59 = vpack.c.bf16 %v1370_v31, %v1370_v31  ;;  %v1416_v63 = vmul.f32 %v2438_v18, %v3478_v10 }
 0x416   : > { %v1368_v60 = vmul.f32 %v3585_v29, %v1345_v53  ;;  %1600 = vst [vmem:[%s3440_s20 + $0x4c] sm:$0xf] %v1986_v13  ;;  %v1441_v62 = vmul.f32 %v3589_v46, %v1418_v25 }
 0x417   : > { %v1984_v4 = vpack.c.bf16 %v1438_v20, %v1438_v20  ;;  %1521 = vst [vmem:[%s3440_s20 + $0x54] sm:$0xf] %v1971_v59  ;;  %v1439_v44 = vmul.f32 %v3589_v46, %v1416_v63 }
 0x418   : > { %v1969_v5 = vpack.c.bf16 %v1368_v60, %v1368_v60  ;;  %v1987_v7 = vpack.c.bf16 %v1441_v62, %v1441_v62 }
 0x419   : > { %1598 = vst [vmem:[%s3440_s20 + $0x34] sm:$0xf] %v1984_v4  ;;  %v1985_v8 = vpack.c.bf16 %v1439_v44, %v1439_v44 }
 0x41a   : > { %1519 = vst [vmem:[%s3440_s20 + $0x3c] sm:$0xf] %v1969_v5  ;;  %1601 = vst [vmem:[%s3440_s20 + $0x58] sm:$0xf] %v1987_v7 }
 0x41b   : > { %1599 = vst [vmem:[%s3440_s20 + $0x40] sm:$0xf] %v1985_v8 }
 0x41c   : > { %v2440_v22 = vpop.eup %2439 }
 0x41d   : > { %v2442_v11 = vpop.eup %2441  ;;  %v1350_v40 = vmul.f32 %v2440_v22, %v3534_v54 }
 0x41e   : > { %v2444_v16 = vpop.eup %2443  ;;  %v1348_v10 = vmul.f32 %v2442_v11, %v3512_v37 }
 0x41f   : > { %v2446_v39 = vpop.eup %2445  ;;  %v1373_v23 = vmul.f32 %v3585_v29, %v1350_v40  ;;  %v1351_v26 = vmul.f32 %v2444_v16, %v3540_v2  ;;  %v2122_v27 = vpop.f32.mrb[28].mxu1 }
 0x420   : > { %v1371_v28 = vmul.f32 %v3585_v29, %v1348_v10  ;;  %v1349_v30 = vmul.f32 %v2446_v39, %v3520_v43  ;;  %v1322_v38 = vmax.f32 %v2122_v27, 1e-24  ;;  %v1196_v33 = vpop.f32.mrb[29].mxu1 }
 0x421   : > { %v1974_v42 = vpack.c.bf16 %v1373_v23, %v1373_v23  ;;  %v1374_v54 = vmul.f32 %v3585_v29, %v1351_v26  ;;  %v1320_v47 = vmax.f32 %v1196_v33, 1e-24  ;;  %v2123_v37 = vpop.f32.mrb[30].mxu1 }
 0x422   : > { %v1972_v34 = vpack.c.bf16 %v1371_v28, %v1371_v28  ;;  %v1372_v14 = vmul.f32 %v3585_v29, %v1349_v30  ;;  %2447 = vrsqrt.f32 %v1322_v38  ;;  %v1323_v2 = vmax.f32 %v2123_v37, 1e-24  ;;  %v1199_v41 = vpop.f32.mrb[31].mxu1 }
 0x423   : > { %1524 = vst [vmem:[%s3440_s20 + $0x78] sm:$0xf] %v1974_v42  ;;  %v1975_v15 = vpack.c.bf16 %v1374_v54, %v1374_v54  ;;  %2449 = vrsqrt.f32 %v1320_v47  ;;  %v1321_v43 = vmax.f32 %v1199_v41, 1e-24 }
 0x424   : > { %1522 = vst [vmem:[%s3440_s20 + $0x60] sm:$0xf] %v1972_v34  ;;  %v1973_v35 = vpack.c.bf16 %v1372_v14, %v1372_v14  ;;  %2451 = vrsqrt.f32 %v1323_v2 }
 0x425   : > { %1525 = vst [vmem:[%s3440_s20 + $0x84] sm:$0xf] %v1975_v15  ;;  %2453 = vrsqrt.f32 %v1321_v43 }
 0x426   : > { %1523 = vst [vmem:[%s3440_s20 + $0x6c] sm:$0xf] %v1973_v35 }
 0x427   : > { %v2150_v36 = vpop.f32.mrb[32].mxu1 }
 0x428   : > { %v1389_v48 = vmax.f32 %v2150_v36, 1e-24  ;;  %v1277_v17 = vpop.f32.mrb[33].mxu1 }
 0x429   : > { %v1387_v61 = vmax.f32 %v1277_v17, 1e-24  ;;  %v2151_v55 = vpop.f32.mrb[34].mxu1 }
 0x42a   : > { %2455 = vrsqrt.f32 %v1389_v48  ;;  %v1390_v45 = vmax.f32 %v2151_v55, 1e-24  ;;  %v1280_v51 = vpop.f32.mrb[35].mxu1 }
 0x42b   : > { %2457 = vrsqrt.f32 %v1387_v61  ;;  %v1388_v56 = vmax.f32 %v1280_v51, 1e-24 }
 0x42c   : > { %v2448_v19 = vpop.eup %2447  ;;  %2459 = vrsqrt.f32 %v1390_v45 }
 0x42d   : > { %v2450_v52 = vpop.eup %2449  ;;  %v1354_v1 = vmul.f32 %v2448_v19, %v3569_v9  ;;  %2461 = vrsqrt.f32 %v1388_v56 }
 0x42e   : > { %v2452_v31 = vpop.eup %2451  ;;  %v1352_v53 = vmul.f32 %v2450_v52, %v3553_v3 }
 0x42f   : > { %v2454_v18 = vpop.eup %2453  ;;  %v1377_v13 = vmul.f32 %v3585_v29, %v1354_v1  ;;  %v1355_v20 = vmul.f32 %v2452_v31, %v3573_v12  ;;  %v2154_v25 = vpop.f32.mrb[36].mxu1 }
 0x430   : > { %v1375_v59 = vmul.f32 %v3585_v29, %v1352_v53  ;;  %v1353_v60 = vmul.f32 %v2454_v18, %v3557_v0  ;;  %v1393_v63 = vmax.f32 %v2154_v25, 1e-24  ;;  %v1293_v4 = vpop.f32.mrb[37].mxu1 }
 0x431   : > { %v1978_v62 = vpack.c.bf16 %v1377_v13, %v1377_v13  ;;  %v1378_v9 = vmul.f32 %v3585_v29, %v1355_v20  ;;  %v1391_v5 = vmax.f32 %v1293_v4, 1e-24  ;;  %v2155_v3 = vpop.f32.mrb[38].mxu1 }
 0x432   : > { %v1976_v44 = vpack.c.bf16 %v1375_v59, %v1375_v59  ;;  %v1376_v7 = vmul.f32 %v3585_v29, %v1353_v60  ;;  %2463 = vrsqrt.f32 %v1393_v63  ;;  %v1394_v12 = vmax.f32 %v2155_v3, 1e-24  ;;  %v1296_v8 = vpop.f32.mrb[39].mxu1 }
 0x433   : > { %1528 = vst [vmem:[%s3440_s20 + $0xa8] sm:$0xf] %v1978_v62  ;;  %v1979_v22 = vpack.c.bf16 %v1378_v9, %v1378_v9  ;;  %2465 = vrsqrt.f32 %v1391_v5  ;;  %v1392_v0 = vmax.f32 %v1296_v8, 1e-24 }
 0x434   : > { %v2456_v11 = vpop.eup %2455  ;;  %1526 = vst [vmem:[%s3440_s20 + $0x90] sm:$0xf] %v1976_v44  ;;  %v1977_v40 = vpack.c.bf16 %v1376_v7, %v1376_v7  ;;  %2467 = vrsqrt.f32 %v1394_v12 }
 0x435   : > { %v2458_v16 = vpop.eup %2457  ;;  %1529 = vst [vmem:[%s3440_s20 + $0xb4] sm:$0xf] %v1979_v22  ;;  %v1421_v10 = vmul.f32 %v2456_v11, %v3537_v57  ;;  %2469 = vrsqrt.f32 %v1392_v0 }
 0x436   : > { %v2460_v29 = vpop.eup %2459  ;;  %1527 = vst [vmem:[%s3440_s20 + $0x9c] sm:$0xf] %v1977_v40  ;;  %v1419_v39 = vmul.f32 %v2458_v16, %v3516_v24 }
 0x437   : > { %v2462_v23 = vpop.eup %2461  ;;  %v1444_v26 = vmul.f32 %v3589_v46, %v1421_v10  ;;  %v1422_v27 = vmul.f32 %v2460_v29, %v3546_v58 }
 0x438   : > { %v1442_v28 = vmul.f32 %v3589_v46, %v1419_v39  ;;  %v1420_v30 = vmul.f32 %v2462_v23, %v3526_v50 }
 0x439   : > { %v1990_v38 = vpack.c.bf16 %v1444_v26, %v1444_v26  ;;  %v1445_v57 = vmul.f32 %v3589_v46, %v1422_v27 }
 0x43a   : > { %v1988_v33 = vpack.c.bf16 %v1442_v28, %v1442_v28  ;;  %v1443_v42 = vmul.f32 %v3589_v46, %v1420_v30 }
 0x43b   : > { %1604 = vst [vmem:[%s3440_s20 + $0x7c] sm:$0xf] %v1990_v38  ;;  %v1991_v24 = vpack.c.bf16 %v1445_v57, %v1445_v57 }
 0x43c   : > { %v2464_v54 = vpop.eup %2463  ;;  %1602 = vst [vmem:[%s3440_s20 + $0x64] sm:$0xf] %v1988_v33  ;;  %v1989_v47 = vpack.c.bf16 %v1443_v42, %v1443_v42 }
 0x43d   : > { %v2466_v58 = vpop.eup %2465  ;;  %1605 = vst [vmem:[%s3440_s20 + $0x88] sm:$0xf] %v1991_v24  ;;  %v1425_v37 = vmul.f32 %v2464_v54, %v3571_v32 }
 0x43e   : > { %v2468_v50 = vpop.eup %2467  ;;  %1603 = vst [vmem:[%s3440_s20 + $0x70] sm:$0xf] %v1989_v47  ;;  %v1423_v34 = vmul.f32 %v2466_v58, %v3555_v49 }
 0x43f   : > { %v2470_v14 = vpop.eup %2469  ;;  %v1448_v2 = vmul.f32 %v3589_v46, %v1425_v37  ;;  %v1426_v41 = vmul.f32 %v2468_v50, %v3579_v21 }
 0x440   : > { %v1446_v15 = vmul.f32 %v3589_v46, %v1423_v34  ;;  %v1424_v43 = vmul.f32 %v2470_v14, %v3563_v6 }
 0x441   : > { %v1994_v32 = vpack.c.bf16 %v1448_v2, %v1448_v2  ;;  %v1449_v35 = vmul.f32 %v3589_v46, %v1426_v41 }
 0x442   : > { %v1992_v49 = vpack.c.bf16 %v1446_v15, %v1446_v15  ;;  %v1447_v36 = vmul.f32 %v3589_v46, %v1424_v43 }
 0x443   : > { %1608 = vst [vmem:[%s3440_s20 + $0xac] sm:$0xf] %v1994_v32  ;;  %v1995_v48 = vpack.c.bf16 %v1449_v35, %v1449_v35 }
 0x444   : > { %1606 = vst [vmem:[%s3440_s20 + $0x94] sm:$0xf] %v1992_v49  ;;  %v1993_v21 = vpack.c.bf16 %v1447_v36, %v1447_v36 }
 0x445   : > { %1609 = vst [vmem:[%s3440_s20 + $0xb8] sm:$0xf] %v1995_v48 }
 0x446   : > { %1607 = vst [vmem:[%s3440_s20 + $0xa0] sm:$0xf] %v1993_v21 }
 0x447   : > { %2656 = shalt.err (!%p2653_p2)
}
 0x448   : > { %s2657_s20 = scalar_lea.hbm %s3691_s17, 3072  ;;  %s2661_s13 = scalar_lea.hbm %s3816_s3, 12288 }
 0x449   : > { %p2658_p0 = scmp.ne.s32.totalorder %s3691_s17, %s2657_s20  ;;  %p2662_p12 = scmp.lt.u32.totalorder %s3691_s17, %s3816_s3 }
 0x44a   : > { %p2663_p13 = scmp.lt.u32.totalorder %s2661_s13, %s2657_s20  ;;  %p2665_p6 = scmp.lt.u32.totalorder %s2657_s20, %s3691_s17 }
 0x44b   : > { %p2659_p1 = pnand %p2658_p0, %p3817_p4 }
 0x44c   : > { %p2664_p3 = por %p2663_p13, %p2662_p12 }
 0x44d   : > { %p2660_p7 = pneg %p2659_p1 }
 0x44e   : > { %p2666_p9 = por %p2665_p6, %p2664_p3 }
 0x450   : > { %p2667_p8 = pnand %p2666_p9, %p2660_p7 }
 0x452   : > { %2670 = shalt.err (!%p2667_p8)
}
 0x453   : > { %s2797_s21 = smov 192   ;;  %s2798_s8 = smov 12  }
 0x454   : > { %2198 = dma.vmem_to_hbm [thread:$0]  (%p3817_p4), %s3685_s2, 3072, %s3691_s17, %s1691_s27, %s2797_s21, %s2797_s21, %s2798_s8  }
 0x455 PF: > { %p2233_p5 = scmp.ge.s32.totalorder %s2781_s7, 2  ;;  %s1722_s12 = sand.u32 1, %s2753_s24  }
 0x456   : > { %p3818_p10 = scmp.ne.s32.totalorder %s3794_s10, 0  ;;  %s1723_s15 = scalar_lea.sflag [#allocation4], %s1722_s12 }
 0x458   : > { %p2221_p11 = pnand %p2233_p5, %p3818_p10 }
 0x45a   : > { %2736 = dma.done.wait (!%p2221_p11), %s1723_s15, 3072  }
 0x45b   : > { %2738 = vsyncadd (!%p2221_p11), %s1723_s15, 4294964224  ;;  %s27_s7 = sadd.s32 1, %s2781_s7   ;;  %s3819_s21 = smov %s2745_s22 }
 0x45c   : > { %p24_p2 = scmp.ge.s32.totalorder %s27_s7, 6   ;;  %s3820_s22 = smov %s2749_s23 }
 0x45d   : > { %s3821_s23 = smov %s3109_s4  ;;  %s3822_s24 = smov %s2757_s25 }
 0x45e   : > { %s3823_s25 = smov %s2761_s26  ;;  %s3824_s26 = smov %s3056_s6 }
 0x45f   : > { %s3825_s27 = smov %s2773_s29  ;;  %s3826_s28 = smov %s2777_s30 }
 0x460   : > { %s3827_s29 = smov %s3830_s1  ;;  %s3828_s30 = smov %s3834_s9 }
 0x461   :  { %26 = sbr.rel (!%p24_p2) target bundleno = 21 (0x15), region = 118 }
 0x468   :  { %1728 = vsyncpa [#allocation3], 1 }
 0x469   :  { %1730 = vsyncpa [#allocation3 + $0x1], 1 }
 0x46a   :  { %1731 = vsyncpa [#allocation6], 1 }
 0x46b   :  { %1733 = vsyncpa [#allocation6 + $0x1], 1 }
 0x46c   :  { %1734 = vsyncpa [#allocation9], 1 }
 0x46d   :  { %1735 = vsyncpa [#allocation12], 1 }
 0x46e   :  { %1736 = vsyncpa [#allocation4], 1 }
 0x46f   :  { %1738 = vsyncpa [#allocation4 + $0x1], 1 }

</bundles_post_ra>
